<compile_context>
chip_gen: v7x
topology: tpu7x:2x2x1
jax: 0.10.0
libtpu: 0.0.40
codegen_flags: <defaults>
</compile_context>

<pallas_src>
import jax
import jax.numpy as jnp
from jax.experimental import pallas as pl
from jax.experimental.pallas import tpu as pltpu

# ----------------------------- config (small synthetic shapes) ---------------
NUM_OF_QUESTIONS = 16            # C.NUM_OF_QUESTIONS
EMB = 32                         # C.EMB
HIDDEN = 32                      # hidden_dim
LAYERS = 1                       # GRU layer_dim (see TODO above)
B, T = 2, 8
NQ2 = 2 * NUM_OF_QUESTIONS       # 32


# ----------------------------- fused kernel ----------------------------------
def _make_dkt_kernel(T, Bb, H, Q):
    f32 = jnp.float32

    def kernel(x_ref, ques_ref, g_ref, aout_ref, ain_ref,
               hg_w1, hg_b1, hg_w2, hg_b2,
               go_w1, go_b1, go_w2, go_b2,
               gi_w1, gi_b1, gi_w2, gi_b2,
               wih_h, wih_din, wih_dout, whh_ref, bih_ref, bhh_ref,
               fc_w, fc_b, kdw12, kdb12, kdwe, kdbe,
               logc_ref, logt_ref, ens_ref, outh_ref, outd_ref):
        dot = lambda a, b: jnp.dot(a, b, preferred_element_type=f32)
        ques = ques_ref[...]                                   # [2Q, E]
        G = g_ref[...]                                         # [2Q, 2Q]

        # ---- SkillGraph: HGNN (2 hypergraph convs; bias before the G matmul) --
        h1 = jnp.maximum(dot(G, dot(ques, hg_w1[...]) + hg_b1[...]), 0.0)
        ques_h = dot(G, dot(h1, hg_w2[...]) + hg_b2[...])      # [2Q, E]

        # ---- TransitionGraph: 2x GCN (bias after the adjacency matmul) --------
        def gcn(adj, w1, b1, w2, b2):
            y1 = jnp.maximum(dot(adj, dot(ques, w1[...])) + b1[...], 0.0)
            return dot(adj, dot(y1, w2[...])) + b2[...]

        ques_out = gcn(aout_ref[...], go_w1, go_b1, go_w2, go_b2)   # [2Q, E/2]
        ques_in = gcn(ain_ref[...], gi_w1, gi_b1, gi_w2, gi_b2)     # [2Q, E/2]

        # ---- hoisted input-side work for ALL timesteps ------------------------
        # ques_d = [ques_in | ques_out]; the concat is folded into the split
        # transition-branch input weights (wih_din / wih_dout), so no relayout.
        X = x_ref[...]                                         # [T*B, 2Q], time-major rows
        x_h = dot(X, ques_h)                                   # [T*B, E]
        x_din = dot(X, ques_in)                                # [T*B, E/2]
        x_dout = dot(X, ques_out)                              # [T*B, E/2]
        # Fused input gates for BOTH branches (columns [r_sg r_tg z_sg z_tg n_sg n_tg]),
        # input biases already folded in -> nothing input-side remains in the loop.
        gi_all = (dot(x_h, wih_h[...]) + dot(x_din, wih_din[...])
                  + dot(x_dout, wih_dout[...]) + bih_ref[...])      # [T*B, 6H]

        whh = whh_ref[...]                                     # [2H, 6H] block-diag (sg, tg)
        bhh = bhh_ref[...]                                     # [1, 6H]

        # ---- recurrence: 1 matmul + 1 sigmoid + 1 tanh per timestep -----------
        h_cat = jnp.zeros((Bb, 2 * H), f32)                    # [h_sg | h_tg]
        hs = []
        for t in range(T):                                     # static unroll (T small)
            gi = gi_all[t * Bb:(t + 1) * Bb, :]                # [B, 6H]
            gh = dot(h_cat, whh) + bhh                         # [B, 6H]
            rz = jax.nn.sigmoid(gi[:, :4 * H] + gh[:, :4 * H])  # [B, 4H]
            r, z = rz[:, :2 * H], rz[:, 2 * H:]                # [r_sg|r_tg], [z_sg|z_tg]
            n = jnp.tanh(gi[:, 4 * H:] + r * gh[:, 4 * H:])    # [n_sg|n_tg]
            h_cat = (1.0 - z) * n + z * h_cat
            hs.append(h_cat)

        # ---- post-recurrence heads as single batched dots over all T*B rows ---
        h_all = jnp.concatenate(hs, axis=0)                    # [T*B, 2H] = [o_h | o_d]
        o_h, o_d = h_all[:, :H], h_all[:, H:]
        fc_out = dot(h_all, fc_w[...]) + fc_b[...]             # [T*B, 2Q] = [logit_c | logit_t]
        theta = jax.nn.sigmoid(dot(h_all, kdw12[...]) + kdb12[...])   # [T*B, H]
        ens_in = jnp.concatenate([theta * o_d, (1.0 - theta) * o_h], axis=1)
        ens = dot(ens_in, kdwe[...]) + kdbe[...]               # [T*B, Q]

        # ---- lane-dense single-shot output stores ------------------------------
        outh_ref[...] = jnp.concatenate([h[:, :H] for h in hs], axis=1)   # [B, T*H]
        outd_ref[...] = jnp.concatenate([h[:, H:] for h in hs], axis=1)   # [B, T*H]
        logc_ref[...] = jnp.concatenate(
            [fc_out[t * Bb:(t + 1) * Bb, :Q] for t in range(T)], axis=1)  # [B, T*Q]
        logt_ref[...] = jnp.concatenate(
            [fc_out[t * Bb:(t + 1) * Bb, Q:] for t in range(T)], axis=1)  # [B, T*Q]
        ens_ref[...] = jnp.concatenate(
            [ens[t * Bb:(t + 1) * Bb, :] for t in range(T)], axis=1)      # [B, T*Q]

    return kernel


# ----------------------------- wrapper-side weight packing --------------------
def _pack_gru_weights(p, E, H, Q):
    f32 = jnp.float32

    def g3(w):  # split fused gate axis (r | z | n)
        return w[..., :H], w[..., H:2 * H], w[..., 2 * H:]

    # Input-side weights: columns in combined order [r_sg r_tg z_sg z_tg n_sg n_tg].
    rs, zs, ns = g3(p["sg_wih"])                       # [E, H] each
    rt, zt, nt = g3(p["tg_wih"])
    zE = jnp.zeros((E, H), f32)
    zE2 = jnp.zeros((E // 2, H), f32)
    wih_h = jnp.concatenate([rs, zE, zs, zE, ns, zE], axis=1)                 # [E, 6H]
    wih_din = jnp.concatenate([zE2, rt[:E // 2], zE2, zt[:E // 2],
                               zE2, nt[:E // 2]], axis=1)                     # [E/2, 6H]
    wih_dout = jnp.concatenate([zE2, rt[E // 2:], zE2, zt[E // 2:],
                                zE2, nt[E // 2:]], axis=1)                    # [E/2, 6H]

    # Recurrent weight: block-diagonal over the two branches, same column order.
    rsh, zsh, nsh = g3(p["sg_whh"])                    # [H, H] each
    rth, zth, nth = g3(p["tg_whh"])
    zH = jnp.zeros((H, H), f32)
    whh = jnp.concatenate([
        jnp.concatenate([rsh, zH, zsh, zH, nsh, zH], axis=1),   # rows fed by h_sg
        jnp.concatenate([zH, rth, zH, zth, zH, nth], axis=1),   # rows fed by h_tg
    ], axis=0)                                                  # [2H, 6H]

    def cat_b(bs, bt):
        return jnp.concatenate([bs[:H], bt[:H], bs[H:2 * H], bt[H:2 * H],
                                bs[2 * H:], bt[2 * H:]]).reshape(1, 6 * H)

    bih = cat_b(p["sg_bih"], p["tg_bih"])
    bhh = cat_b(p["sg_bhh"], p["tg_bhh"])

    # Fused FC heads (rows [o_h; o_d], columns [logit_c | logit_t]).
    zHQ = jnp.zeros((H, Q), f32)
    fc_w = jnp.concatenate([
        jnp.concatenate([p["sg_fc_w"], zHQ], axis=1),
        jnp.concatenate([zHQ, p["tg_fc_w"]], axis=1)], axis=0)  # [2H, 2Q]
    fc_b = jnp.concatenate([p["sg_fc_b"], p["tg_fc_b"]]).reshape(1, 2 * Q)

    # KD module: theta = sigmoid(o_h @ W1 + o_d @ W2 + b1 + b2);
    # ensemble = [theta*o_d | (1-theta)*o_h] @ [We_d; We_h] + be  (PyTorch cat order).
    kdw12 = jnp.concatenate([p["kd_w1"], p["kd_w2"]], axis=0)   # [2H, H]
    kdb12 = (p["kd_b1"] + p["kd_b2"]).reshape(1, H)
    kdwe = jnp.concatenate([p["kd_we_d"], p["kd_we_h"]], axis=0)  # [2H, Q]
    kdbe = p["kd_be"].reshape(1, Q)
    return (wih_h, wih_din, wih_dout, whh, bih, bhh,
            fc_w, fc_b, kdw12, kdb12, kdwe, kdbe)


# ----------------------------- DKT forward (single pallas_call) ---------------
def dkt_forward(x, p):
    Bb, Tt, _ = x.shape
    E, H, Q = EMB, HIDDEN, NUM_OF_QUESTIONS
    # Time-major rows so every per-step slice inside the kernel is contiguous.
    x_flat = jnp.transpose(x, (1, 0, 2)).reshape(Tt * Bb, 2 * Q)

    args = (
        x_flat, p["ques"], p["G"], p["adj_out"], p["adj_in"],
        p["hg_w1"], p["hg_b1"].reshape(1, E), p["hg_w2"], p["hg_b2"].reshape(1, E),
        p["go_w1"], p["go_b1"].reshape(1, E), p["go_w2"], p["go_b2"].reshape(1, E // 2),
        p["gi_w1"], p["gi_b1"].reshape(1, E), p["gi_w2"], p["gi_b2"].reshape(1, E // 2),
        *_pack_gru_weights(p, E, H, Q),
    )

    def full_spec(a):
        return pl.BlockSpec(a.shape, lambda i, _nd=a.ndim: (0,) * _nd)

    out_shapes = (
        jax.ShapeDtypeStruct((Bb, Tt * Q), jnp.float32),   # logit_c   [B, T*Q]
        jax.ShapeDtypeStruct((Bb, Tt * Q), jnp.float32),   # logit_t
        jax.ShapeDtypeStruct((Bb, Tt * Q), jnp.float32),   # ensemble_logit
        jax.ShapeDtypeStruct((Bb, Tt * H), jnp.float32),   # out_h     [B, T*H]
        jax.ShapeDtypeStruct((Bb, Tt * H), jnp.float32),   # out_d
    )
    out_specs = tuple(pl.BlockSpec(s.shape, lambda i: (0, 0)) for s in out_shapes)

    logc, logt, ens, outh, outd = pl.pallas_call(
        _make_dkt_kernel(Tt, Bb, H, Q),
        out_shape=out_shapes,
        grid=(1,),
        in_specs=[full_spec(a) for a in args],
        out_specs=out_specs,
        compiler_params=pltpu.CompilerParams(dimension_semantics=("arbitrary",)),
        cost_estimate=pl.CostEstimate(flops=2_000_000, transcendentals=4_000,
                                      bytes_accessed=200_000),
    )(*args)

    # Only cheap reshapes (no transposes) to recover batch-first [B, T, *] layout.
    return (logc.reshape(Bb, Tt, Q), logt.reshape(Bb, Tt, Q), ens.reshape(Bb, Tt, Q),
            outh.reshape(Bb, Tt, H), outd.reshape(Bb, Tt, H))


# ----------------------------- parameter init --------------------------------
def init_params(key):
    ks = iter(jax.random.split(key, 64))
    nrm = lambda shape, s=0.1: (s * jax.random.normal(next(ks), shape)).astype(jnp.float32)
    E, H, Q = EMB, HIDDEN, NUM_OF_QUESTIONS
    p = {
        # embedding table + graph structures
        "ques": nrm((NQ2, E), 1.0),
        "G": nrm((NQ2, NQ2)),
        "adj_out": nrm((NQ2, NQ2)),
        "adj_in": nrm((NQ2, NQ2)),
        # HGNN (emb -> emb -> emb)
        "hg_w1": nrm((E, E)), "hg_b1": nrm((E,)),
        "hg_w2": nrm((E, E)), "hg_b2": nrm((E,)),
        # GCN out / in (emb -> emb -> emb//2)
        "go_w1": nrm((E, E)), "go_b1": nrm((E,)),
        "go_w2": nrm((E, E // 2)), "go_b2": nrm((E // 2,)),
        "gi_w1": nrm((E, E)), "gi_b1": nrm((E,)),
        "gi_w2": nrm((E, E // 2)), "gi_b2": nrm((E // 2,)),
        # GRU weights: transpose of PyTorch weight_ih_l0 / weight_hh_l0, fused
        # gate order (r | z | n) along the last axis.
        "sg_wih": nrm((E, 3 * H)), "sg_whh": nrm((H, 3 * H)),
        "sg_bih": nrm((3 * H,)), "sg_bhh": nrm((3 * H,)),
        "sg_fc_w": nrm((H, Q)), "sg_fc_b": nrm((Q,)),
        "tg_wih": nrm((E, 3 * H)), "tg_whh": nrm((H, 3 * H)),
        "tg_bih": nrm((3 * H,)), "tg_bhh": nrm((3 * H,)),
        "tg_fc_w": nrm((H, Q)), "tg_fc_b": nrm((Q,)),
        # KD module (fc_ensemble split into the out_d / out_h halves of the cat order)
        "kd_w1": nrm((H, H)), "kd_b1": nrm((H,)),
        "kd_w2": nrm((H, H)), "kd_b2": nrm((H,)),
        "kd_we_d": nrm((H, Q)), "kd_we_h": nrm((H, Q)), "kd_be": nrm((Q,)),
    }
    return p


# ----------------------------- main -------------------------------------------
if __name__ == "__main__":
    key = jax.random.PRNGKey(0)
    kx, kp = jax.random.split(key)

    # DKT input: one-hot (question, correctness) encoding -> [B, T, 2Q]
    idx = jax.random.randint(kx, (B, T), 0, NQ2)
    x = jax.nn.one_hot(idx, NQ2, dtype=jnp.float32)

    params = init_params(kp)

    fwd = jax.jit(dkt_forward)
    logit_c, logit_t, ensemble_logit, out_h, out_d = fwd(x, params)
    jax.block_until_ready((logit_c, logit_t, ensemble_logit, out_h, out_d))

    assert logit_c.shape == (B, T, NUM_OF_QUESTIONS)
    assert logit_t.shape == (B, T, NUM_OF_QUESTIONS)
    assert ensemble_logit.shape == (B, T, NUM_OF_QUESTIONS)
    assert out_h.shape == (B, T, HIDDEN)
    assert out_d.shape == (B, T, HIDDEN)
    assert all(bool(jnp.all(jnp.isfinite(a))) for a in
               (logit_c, logit_t, ensemble_logit, out_h, out_d))

    print("KERNEL_OK")
</pallas_src>

<mosaic_0001>
module attributes {stable_mosaic.version = 11 : i64} {
  func.func @kernel(%arg0: i32, %arg1: memref<16x32xf32, #tpu.memory_space<vmem>>, %arg2: memref<32x32xf32, #tpu.memory_space<vmem>>, %arg3: memref<32x32xf32, #tpu.memory_space<vmem>>, %arg4: memref<32x32xf32, #tpu.memory_space<vmem>>, %arg5: memref<32x32xf32, #tpu.memory_space<vmem>>, %arg6: memref<32x32xf32, #tpu.memory_space<vmem>>, %arg7: memref<1x32xf32, #tpu.memory_space<vmem>>, %arg8: memref<32x32xf32, #tpu.memory_space<vmem>>, %arg9: memref<1x32xf32, #tpu.memory_space<vmem>>, %arg10: memref<32x32xf32, #tpu.memory_space<vmem>>, %arg11: memref<1x32xf32, #tpu.memory_space<vmem>>, %arg12: memref<32x16xf32, #tpu.memory_space<vmem>>, %arg13: memref<1x16xf32, #tpu.memory_space<vmem>>, %arg14: memref<32x32xf32, #tpu.memory_space<vmem>>, %arg15: memref<1x32xf32, #tpu.memory_space<vmem>>, %arg16: memref<32x16xf32, #tpu.memory_space<vmem>>, %arg17: memref<1x16xf32, #tpu.memory_space<vmem>>, %arg18: memref<32x192xf32, #tpu.memory_space<vmem>>, %arg19: memref<16x192xf32, #tpu.memory_space<vmem>>, %arg20: memref<16x192xf32, #tpu.memory_space<vmem>>, %arg21: memref<64x192xf32, #tpu.memory_space<vmem>>, %arg22: memref<1x192xf32, #tpu.memory_space<vmem>>, %arg23: memref<1x192xf32, #tpu.memory_space<vmem>>, %arg24: memref<64x32xf32, #tpu.memory_space<vmem>>, %arg25: memref<1x32xf32, #tpu.memory_space<vmem>>, %arg26: memref<64x32xf32, #tpu.memory_space<vmem>>, %arg27: memref<1x32xf32, #tpu.memory_space<vmem>>, %arg28: memref<64x16xf32, #tpu.memory_space<vmem>>, %arg29: memref<1x16xf32, #tpu.memory_space<vmem>>, %arg30: memref<2x128xf32, #tpu.memory_space<vmem>>, %arg31: memref<2x128xf32, #tpu.memory_space<vmem>>, %arg32: memref<2x128xf32, #tpu.memory_space<vmem>>, %arg33: memref<2x256xf32, #tpu.memory_space<vmem>>, %arg34: memref<2x256xf32, #tpu.memory_space<vmem>>) attributes {dimension_semantics = [#tpu.dimension_semantics<arbitrary>], iteration_bounds = array<i64: 1>, scalar_prefetch = 0 : i64, scratch_operands = 0 : i64, tpu.core_type = #tpu.core_type<tc>, window_params = [{pipeline_mode = #tpu.pipeline_mode<synchronous>, transform_indices = @transform_0, window_bounds = array<i64: 16, 32>}, {pipeline_mode = #tpu.pipeline_mode<synchronous>, transform_indices = @transform_1, window_bounds = array<i64: 32, 32>}, {pipeline_mode = #tpu.pipeline_mode<synchronous>, transform_indices = @transform_2, window_bounds = array<i64: 32, 32>}, {pipeline_mode = #tpu.pipeline_mode<synchronous>, transform_indices = @transform_3, window_bounds = array<i64: 32, 32>}, {pipeline_mode = #tpu.pipeline_mode<synchronous>, transform_indices = @transform_4, window_bounds = array<i64: 32, 32>}, {pipeline_mode = #tpu.pipeline_mode<synchronous>, transform_indices = @transform_5, window_bounds = array<i64: 32, 32>}, {pipeline_mode = #tpu.pipeline_mode<synchronous>, transform_indices = @transform_6, window_bounds = array<i64: 1, 32>}, {pipeline_mode = #tpu.pipeline_mode<synchronous>, transform_indices = @transform_7, window_bounds = array<i64: 32, 32>}, {pipeline_mode = #tpu.pipeline_mode<synchronous>, transform_indices = @transform_8, window_bounds = array<i64: 1, 32>}, {pipeline_mode = #tpu.pipeline_mode<synchronous>, transform_indices = @transform_9, window_bounds = array<i64: 32, 32>}, {pipeline_mode = #tpu.pipeline_mode<synchronous>, transform_indices = @transform_10, window_bounds = array<i64: 1, 32>}, {pipeline_mode = #tpu.pipeline_mode<synchronous>, transform_indices = @transform_11, window_bounds = array<i64: 32, 16>}, {pipeline_mode = #tpu.pipeline_mode<synchronous>, transform_indices = @transform_12, window_bounds = array<i64: 1, 16>}, {pipeline_mode = #tpu.pipeline_mode<synchronous>, transform_indices = @transform_13, window_bounds = array<i64: 32, 32>}, {pipeline_mode = #tpu.pipeline_mode<synchronous>, transform_indices = @transform_14, window_bounds = array<i64: 1, 32>}, {pipeline_mode = #tpu.pipeline_mode<synchronous>, transform_indices = @transform_15, window_bounds = array<i64: 32, 16>}, {pipeline_mode = #tpu.pipeline_mode<synchronous>, transform_indices = @transform_16, window_bounds = array<i64: 1, 16>}, {pipeline_mode = #tpu.pipeline_mode<synchronous>, transform_indices = @transform_17, window_bounds = array<i64: 32, 192>}, {pipeline_mode = #tpu.pipeline_mode<synchronous>, transform_indices = @transform_18, window_bounds = array<i64: 16, 192>}, {pipeline_mode = #tpu.pipeline_mode<synchronous>, transform_indices = @transform_19, window_bounds = array<i64: 16, 192>}, {pipeline_mode = #tpu.pipeline_mode<synchronous>, transform_indices = @transform_20, window_bounds = array<i64: 64, 192>}, {pipeline_mode = #tpu.pipeline_mode<synchronous>, transform_indices = @transform_21, window_bounds = array<i64: 1, 192>}, {pipeline_mode = #tpu.pipeline_mode<synchronous>, transform_indices = @transform_22, window_bounds = array<i64: 1, 192>}, {pipeline_mode = #tpu.pipeline_mode<synchronous>, transform_indices = @transform_23, window_bounds = array<i64: 64, 32>}, {pipeline_mode = #tpu.pipeline_mode<synchronous>, transform_indices = @transform_24, window_bounds = array<i64: 1, 32>}, {pipeline_mode = #tpu.pipeline_mode<synchronous>, transform_indices = @transform_25, window_bounds = array<i64: 64, 32>}, {pipeline_mode = #tpu.pipeline_mode<synchronous>, transform_indices = @transform_26, window_bounds = array<i64: 1, 32>}, {pipeline_mode = #tpu.pipeline_mode<synchronous>, transform_indices = @transform_27, window_bounds = array<i64: 64, 16>}, {pipeline_mode = #tpu.pipeline_mode<synchronous>, transform_indices = @transform_28, window_bounds = array<i64: 1, 16>}, {pipeline_mode = #tpu.pipeline_mode<synchronous>, transform_indices = @transform_29, window_bounds = array<i64: 2, 128>}, {pipeline_mode = #tpu.pipeline_mode<synchronous>, transform_indices = @transform_30, window_bounds = array<i64: 2, 128>}, {pipeline_mode = #tpu.pipeline_mode<synchronous>, transform_indices = @transform_31, window_bounds = array<i64: 2, 128>}, {pipeline_mode = #tpu.pipeline_mode<synchronous>, transform_indices = @transform_32, window_bounds = array<i64: 2, 256>}, {pipeline_mode = #tpu.pipeline_mode<synchronous>, transform_indices = @transform_33, window_bounds = array<i64: 2, 256>}]} {
    %c0 = arith.constant 0 : index
    %c0_0 = arith.constant 0 : index
    %0 = vector.load %arg2[%c0, %c0_0] : memref<32x32xf32, #tpu.memory_space<vmem>>, vector<32x32xf32>
    %c0_1 = arith.constant 0 : index
    %c0_2 = arith.constant 0 : index
    %1 = vector.load %arg3[%c0_1, %c0_2] : memref<32x32xf32, #tpu.memory_space<vmem>>, vector<32x32xf32>
    %c0_3 = arith.constant 0 : index
    %c0_4 = arith.constant 0 : index
    %2 = vector.load %arg6[%c0_3, %c0_4] : memref<32x32xf32, #tpu.memory_space<vmem>>, vector<32x32xf32>
    %cst = arith.constant dense<0.000000e+00> : vector<32x32xf32>
    %3 = tpu.matmul %0, %2, %cst {dimension_numbers = #tpu.dot_dimension_numbers<[1], [0], [0], [1], [0, 0, 1, 1], [], []>} : vector<32x32xf32>, vector<32x32xf32>, vector<32x32xf32> -> vector<32x32xf32>
    %c0_5 = arith.constant 0 : index
    %c0_6 = arith.constant 0 : index
    %4 = vector.load %arg7[%c0_5, %c0_6] : memref<1x32xf32, #tpu.memory_space<vmem>>, vector<1x32xf32>
    %5 = vector.broadcast %4 : vector<1x32xf32> to vector<32x32xf32>
    %6 = arith.addf %3, %5 : vector<32x32xf32>
    %cst_7 = arith.constant dense<0.000000e+00> : vector<32x32xf32>
    %7 = tpu.matmul %1, %6, %cst_7 {dimension_numbers = #tpu.dot_dimension_numbers<[1], [0], [0], [1], [0, 0, 1, 1], [], []>} : vector<32x32xf32>, vector<32x32xf32>, vector<32x32xf32> -> vector<32x32xf32>
    %cst_8 = arith.constant 0.000000e+00 : f32
    %8 = vector.broadcast %cst_8 : f32 to vector<32x32xf32>
    %9 = arith.maximumf %7, %8 : vector<32x32xf32>
    %c0_9 = arith.constant 0 : index
    %c0_10 = arith.constant 0 : index
    %10 = vector.load %arg8[%c0_9, %c0_10] : memref<32x32xf32, #tpu.memory_space<vmem>>, vector<32x32xf32>
    %cst_11 = arith.constant dense<0.000000e+00> : vector<32x32xf32>
    %11 = tpu.matmul %9, %10, %cst_11 {dimension_numbers = #tpu.dot_dimension_numbers<[1], [0], [0], [1], [0, 0, 1, 1], [], []>} : vector<32x32xf32>, vector<32x32xf32>, vector<32x32xf32> -> vector<32x32xf32>
    %c0_12 = arith.constant 0 : index
    %c0_13 = arith.constant 0 : index
    %12 = vector.load %arg9[%c0_12, %c0_13] : memref<1x32xf32, #tpu.memory_space<vmem>>, vector<1x32xf32>
    %13 = vector.broadcast %12 : vector<1x32xf32> to vector<32x32xf32>
    %14 = arith.addf %11, %13 : vector<32x32xf32>
    %cst_14 = arith.constant dense<0.000000e+00> : vector<32x32xf32>
    %15 = tpu.matmul %1, %14, %cst_14 {dimension_numbers = #tpu.dot_dimension_numbers<[1], [0], [0], [1], [0, 0, 1, 1], [], []>} : vector<32x32xf32>, vector<32x32xf32>, vector<32x32xf32> -> vector<32x32xf32>
    %c0_15 = arith.constant 0 : index
    %c0_16 = arith.constant 0 : index
    %16 = vector.load %arg4[%c0_15, %c0_16] : memref<32x32xf32, #tpu.memory_space<vmem>>, vector<32x32xf32>
    %c0_17 = arith.constant 0 : index
    %c0_18 = arith.constant 0 : index
    %17 = vector.load %arg10[%c0_17, %c0_18] : memref<32x32xf32, #tpu.memory_space<vmem>>, vector<32x32xf32>
    %cst_19 = arith.constant dense<0.000000e+00> : vector<32x32xf32>
    %18 = tpu.matmul %0, %17, %cst_19 {dimension_numbers = #tpu.dot_dimension_numbers<[1], [0], [0], [1], [0, 0, 1, 1], [], []>} : vector<32x32xf32>, vector<32x32xf32>, vector<32x32xf32> -> vector<32x32xf32>
    %cst_20 = arith.constant dense<0.000000e+00> : vector<32x32xf32>
    %19 = tpu.matmul %16, %18, %cst_20 {dimension_numbers = #tpu.dot_dimension_numbers<[1], [0], [0], [1], [0, 0, 1, 1], [], []>} : vector<32x32xf32>, vector<32x32xf32>, vector<32x32xf32> -> vector<32x32xf32>
    %c0_21 = arith.constant 0 : index
    %c0_22 = arith.constant 0 : index
    %20 = vector.load %arg11[%c0_21, %c0_22] : memref<1x32xf32, #tpu.memory_space<vmem>>, vector<1x32xf32>
    %21 = vector.broadcast %20 : vector<1x32xf32> to vector<32x32xf32>
    %22 = arith.addf %19, %21 : vector<32x32xf32>
    %cst_23 = arith.constant 0.000000e+00 : f32
    %23 = vector.broadcast %cst_23 : f32 to vector<32x32xf32>
    %24 = arith.maximumf %22, %23 : vector<32x32xf32>
    %c0_24 = arith.constant 0 : index
    %c0_25 = arith.constant 0 : index
    %25 = vector.load %arg12[%c0_24, %c0_25] : memref<32x16xf32, #tpu.memory_space<vmem>>, vector<32x16xf32>
    %cst_26 = arith.constant dense<0.000000e+00> : vector<32x16xf32>
    %26 = tpu.matmul %24, %25, %cst_26 {dimension_numbers = #tpu.dot_dimension_numbers<[1], [0], [0], [1], [0, 0, 1, 1], [], []>} : vector<32x32xf32>, vector<32x16xf32>, vector<32x16xf32> -> vector<32x16xf32>
    %cst_27 = arith.constant dense<0.000000e+00> : vector<32x16xf32>
    %27 = tpu.matmul %16, %26, %cst_27 {dimension_numbers = #tpu.dot_dimension_numbers<[1], [0], [0], [1], [0, 0, 1, 1], [], []>} : vector<32x32xf32>, vector<32x16xf32>, vector<32x16xf32> -> vector<32x16xf32>
    %c0_28 = arith.constant 0 : index
    %c0_29 = arith.constant 0 : index
    %28 = vector.load %arg13[%c0_28, %c0_29] : memref<1x16xf32, #tpu.memory_space<vmem>>, vector<1x16xf32>
    %29 = vector.broadcast %28 : vector<1x16xf32> to vector<32x16xf32>
    %30 = arith.addf %27, %29 : vector<32x16xf32>
    %c0_30 = arith.constant 0 : index
    %c0_31 = arith.constant 0 : index
    %31 = vector.load %arg5[%c0_30, %c0_31] : memref<32x32xf32, #tpu.memory_space<vmem>>, vector<32x32xf32>
    %c0_32 = arith.constant 0 : index
    %c0_33 = arith.constant 0 : index
    %32 = vector.load %arg14[%c0_32, %c0_33] : memref<32x32xf32, #tpu.memory_space<vmem>>, vector<32x32xf32>
    %cst_34 = arith.constant dense<0.000000e+00> : vector<32x32xf32>
    %33 = tpu.matmul %0, %32, %cst_34 {dimension_numbers = #tpu.dot_dimension_numbers<[1], [0], [0], [1], [0, 0, 1, 1], [], []>} : vector<32x32xf32>, vector<32x32xf32>, vector<32x32xf32> -> vector<32x32xf32>
    %cst_35 = arith.constant dense<0.000000e+00> : vector<32x32xf32>
    %34 = tpu.matmul %31, %33, %cst_35 {dimension_numbers = #tpu.dot_dimension_numbers<[1], [0], [0], [1], [0, 0, 1, 1], [], []>} : vector<32x32xf32>, vector<32x32xf32>, vector<32x32xf32> -> vector<32x32xf32>
    %c0_36 = arith.constant 0 : index
    %c0_37 = arith.constant 0 : index
    %35 = vector.load %arg15[%c0_36, %c0_37] : memref<1x32xf32, #tpu.memory_space<vmem>>, vector<1x32xf32>
    %36 = vector.broadcast %35 : vector<1x32xf32> to vector<32x32xf32>
    %37 = arith.addf %34, %36 : vector<32x32xf32>
    %cst_38 = arith.constant 0.000000e+00 : f32
    %38 = vector.broadcast %cst_38 : f32 to vector<32x32xf32>
    %39 = arith.maximumf %37, %38 : vector<32x32xf32>
    %c0_39 = arith.constant 0 : index
    %c0_40 = arith.constant 0 : index
    %40 = vector.load %arg16[%c0_39, %c0_40] : memref<32x16xf32, #tpu.memory_space<vmem>>, vector<32x16xf32>
    %cst_41 = arith.constant dense<0.000000e+00> : vector<32x16xf32>
    %41 = tpu.matmul %39, %40, %cst_41 {dimension_numbers = #tpu.dot_dimension_numbers<[1], [0], [0], [1], [0, 0, 1, 1], [], []>} : vector<32x32xf32>, vector<32x16xf32>, vector<32x16xf32> -> vector<32x16xf32>
    %cst_42 = arith.constant dense<0.000000e+00> : vector<32x16xf32>
    %42 = tpu.matmul %31, %41, %cst_42 {dimension_numbers = #tpu.dot_dimension_numbers<[1], [0], [0], [1], [0, 0, 1, 1], [], []>} : vector<32x32xf32>, vector<32x16xf32>, vector<32x16xf32> -> vector<32x16xf32>
    %c0_43 = arith.constant 0 : index
    %c0_44 = arith.constant 0 : index
    %43 = vector.load %arg17[%c0_43, %c0_44] : memref<1x16xf32, #tpu.memory_space<vmem>>, vector<1x16xf32>
    %44 = vector.broadcast %43 : vector<1x16xf32> to vector<32x16xf32>
    %45 = arith.addf %42, %44 : vector<32x16xf32>
    %c0_45 = arith.constant 0 : index
    %c0_46 = arith.constant 0 : index
    %46 = vector.load %arg1[%c0_45, %c0_46] : memref<16x32xf32, #tpu.memory_space<vmem>>, vector<16x32xf32>
    %cst_47 = arith.constant dense<0.000000e+00> : vector<16x32xf32>
    %47 = tpu.matmul %46, %15, %cst_47 {dimension_numbers = #tpu.dot_dimension_numbers<[1], [0], [0], [1], [0, 0, 1, 1], [], []>} : vector<16x32xf32>, vector<32x32xf32>, vector<16x32xf32> -> vector<16x32xf32>
    %cst_48 = arith.constant dense<0.000000e+00> : vector<16x16xf32>
    %48 = tpu.matmul %46, %45, %cst_48 {dimension_numbers = #tpu.dot_dimension_numbers<[1], [0], [0], [1], [0, 0, 1, 1], [], []>} : vector<16x32xf32>, vector<32x16xf32>, vector<16x16xf32> -> vector<16x16xf32>
    %cst_49 = arith.constant dense<0.000000e+00> : vector<16x16xf32>
    %49 = tpu.matmul %46, %30, %cst_49 {dimension_numbers = #tpu.dot_dimension_numbers<[1], [0], [0], [1], [0, 0, 1, 1], [], []>} : vector<16x32xf32>, vector<32x16xf32>, vector<16x16xf32> -> vector<16x16xf32>
    %c0_50 = arith.constant 0 : index
    %c0_51 = arith.constant 0 : index
    %50 = vector.load %arg18[%c0_50, %c0_51] : memref<32x192xf32, #tpu.memory_space<vmem>>, vector<32x192xf32>
    %cst_52 = arith.constant dense<0.000000e+00> : vector<16x192xf32>
    %51 = tpu.matmul %47, %50, %cst_52 {dimension_numbers = #tpu.dot_dimension_numbers<[1], [0], [0], [1], [0, 0, 1, 1], [], []>} : vector<16x32xf32>, vector<32x192xf32>, vector<16x192xf32> -> vector<16x192xf32>
    %c0_53 = arith.constant 0 : index
    %c0_54 = arith.constant 0 : index
    %52 = vector.load %arg19[%c0_53, %c0_54] : memref<16x192xf32, #tpu.memory_space<vmem>>, vector<16x192xf32>
    %cst_55 = arith.constant dense<0.000000e+00> : vector<16x192xf32>
    %53 = tpu.matmul %48, %52, %cst_55 {dimension_numbers = #tpu.dot_dimension_numbers<[1], [0], [0], [1], [0, 0, 1, 1], [], []>} : vector<16x16xf32>, vector<16x192xf32>, vector<16x192xf32> -> vector<16x192xf32>
    %54 = arith.addf %51, %53 : vector<16x192xf32>
    %c0_56 = arith.constant 0 : index
    %c0_57 = arith.constant 0 : index
    %55 = vector.load %arg20[%c0_56, %c0_57] : memref<16x192xf32, #tpu.memory_space<vmem>>, vector<16x192xf32>
    %cst_58 = arith.constant dense<0.000000e+00> : vector<16x192xf32>
    %56 = tpu.matmul %49, %55, %cst_58 {dimension_numbers = #tpu.dot_dimension_numbers<[1], [0], [0], [1], [0, 0, 1, 1], [], []>} : vector<16x16xf32>, vector<16x192xf32>, vector<16x192xf32> -> vector<16x192xf32>
    %57 = arith.addf %54, %56 : vector<16x192xf32>
    %c0_59 = arith.constant 0 : index
    %c0_60 = arith.constant 0 : index
    %58 = vector.load %arg22[%c0_59, %c0_60] : memref<1x192xf32, #tpu.memory_space<vmem>>, vector<1x192xf32>
    %59 = vector.broadcast %58 : vector<1x192xf32> to vector<16x192xf32>
    %60 = arith.addf %57, %59 : vector<16x192xf32>
    %c0_61 = arith.constant 0 : index
    %c0_62 = arith.constant 0 : index
    %61 = vector.load %arg21[%c0_61, %c0_62] : memref<64x192xf32, #tpu.memory_space<vmem>>, vector<64x192xf32>
    %c0_63 = arith.constant 0 : index
    %c0_64 = arith.constant 0 : index
    %62 = vector.load %arg23[%c0_63, %c0_64] : memref<1x192xf32, #tpu.memory_space<vmem>>, vector<1x192xf32>
    %cst_65 = arith.constant 0.000000e+00 : f32
    %63 = vector.broadcast %cst_65 : f32 to vector<2x64xf32>
    %64 = vector.extract_strided_slice %60 {offsets = [0, 0], sizes = [2, 192], strides = [1, 1]} : vector<16x192xf32> to vector<2x192xf32>
    %cst_66 = arith.constant dense<0.000000e+00> : vector<2x192xf32>
    %65 = tpu.matmul %63, %61, %cst_66 {dimension_numbers = #tpu.dot_dimension_numbers<[1], [0], [0], [1], [0, 0, 1, 1], [], []>} : vector<2x64xf32>, vector<64x192xf32>, vector<2x192xf32> -> vector<2x192xf32>
    %66 = vector.broadcast %62 : vector<1x192xf32> to vector<2x192xf32>
    %67 = arith.addf %65, %66 : vector<2x192xf32>
    %68 = vector.extract_strided_slice %64 {offsets = [0, 0], sizes = [2, 128], strides = [1, 1]} : vector<2x192xf32> to vector<2x128xf32>
    %69 = vector.extract_strided_slice %67 {offsets = [0, 0], sizes = [2, 128], strides = [1, 1]} : vector<2x192xf32> to vector<2x128xf32>
    %70 = arith.addf %68, %69 : vector<2x128xf32>
    %71 = arith.negf %70 : vector<2x128xf32>
    %72 = math.exp %71 : vector<2x128xf32>
    %cst_67 = arith.constant 1.000000e+00 : f32
    %73 = vector.broadcast %cst_67 : f32 to vector<2x128xf32>
    %74 = arith.addf %73, %72 : vector<2x128xf32>
    %75 = arith.divf %73, %74 : vector<2x128xf32>
    %76 = vector.extract_strided_slice %75 {offsets = [0, 0], sizes = [2, 64], strides = [1, 1]} : vector<2x128xf32> to vector<2x64xf32>
    %77 = vector.extract_strided_slice %75 {offsets = [0, 64], sizes = [2, 64], strides = [1, 1]} : vector<2x128xf32> to vector<2x64xf32>
    %78 = vector.extract_strided_slice %64 {offsets = [0, 128], sizes = [2, 64], strides = [1, 1]} : vector<2x192xf32> to vector<2x64xf32>
    %79 = vector.extract_strided_slice %67 {offsets = [0, 128], sizes = [2, 64], strides = [1, 1]} : vector<2x192xf32> to vector<2x64xf32>
    %80 = arith.mulf %76, %79 : vector<2x64xf32>
    %81 = arith.addf %78, %80 : vector<2x64xf32>
    %82 = math.tanh %81 : vector<2x64xf32>
    %cst_68 = arith.constant 1.000000e+00 : f32
    %83 = vector.broadcast %cst_68 : f32 to vector<2x64xf32>
    %84 = arith.subf %83, %77 : vector<2x64xf32>
    %85 = arith.mulf %84, %82 : vector<2x64xf32>
    %86 = arith.mulf %77, %63 : vector<2x64xf32>
    %87 = arith.addf %85, %86 : vector<2x64xf32>
    %88 = vector.extract_strided_slice %60 {offsets = [2, 0], sizes = [2, 192], strides = [1, 1]} : vector<16x192xf32> to vector<2x192xf32>
    %cst_69 = arith.constant dense<0.000000e+00> : vector<2x192xf32>
    %89 = tpu.matmul %87, %61, %cst_69 {dimension_numbers = #tpu.dot_dimension_numbers<[1], [0], [0], [1], [0, 0, 1, 1], [], []>} : vector<2x64xf32>, vector<64x192xf32>, vector<2x192xf32> -> vector<2x192xf32>
    %90 = vector.broadcast %62 : vector<1x192xf32> to vector<2x192xf32>
    %91 = arith.addf %89, %90 : vector<2x192xf32>
    %92 = vector.extract_strided_slice %88 {offsets = [0, 0], sizes = [2, 128], strides = [1, 1]} : vector<2x192xf32> to vector<2x128xf32>
    %93 = vector.extract_strided_slice %91 {offsets = [0, 0], sizes = [2, 128], strides = [1, 1]} : vector<2x192xf32> to vector<2x128xf32>
    %94 = arith.addf %92, %93 : vector<2x128xf32>
    %95 = arith.negf %94 : vector<2x128xf32>
    %96 = math.exp %95 : vector<2x128xf32>
    %cst_70 = arith.constant 1.000000e+00 : f32
    %97 = vector.broadcast %cst_70 : f32 to vector<2x128xf32>
    %98 = arith.addf %97, %96 : vector<2x128xf32>
    %99 = arith.divf %97, %98 : vector<2x128xf32>
    %100 = vector.extract_strided_slice %99 {offsets = [0, 0], sizes = [2, 64], strides = [1, 1]} : vector<2x128xf32> to vector<2x64xf32>
    %101 = vector.extract_strided_slice %99 {offsets = [0, 64], sizes = [2, 64], strides = [1, 1]} : vector<2x128xf32> to vector<2x64xf32>
    %102 = vector.extract_strided_slice %88 {offsets = [0, 128], sizes = [2, 64], strides = [1, 1]} : vector<2x192xf32> to vector<2x64xf32>
    %103 = vector.extract_strided_slice %91 {offsets = [0, 128], sizes = [2, 64], strides = [1, 1]} : vector<2x192xf32> to vector<2x64xf32>
    %104 = arith.mulf %100, %103 : vector<2x64xf32>
    %105 = arith.addf %102, %104 : vector<2x64xf32>
    %106 = math.tanh %105 : vector<2x64xf32>
    %cst_71 = arith.constant 1.000000e+00 : f32
    %107 = vector.broadcast %cst_71 : f32 to vector<2x64xf32>
    %108 = arith.subf %107, %101 : vector<2x64xf32>
    %109 = arith.mulf %108, %106 : vector<2x64xf32>
    %110 = arith.mulf %101, %87 : vector<2x64xf32>
    %111 = arith.addf %109, %110 : vector<2x64xf32>
    %112 = vector.extract_strided_slice %60 {offsets = [4, 0], sizes = [2, 192], strides = [1, 1]} : vector<16x192xf32> to vector<2x192xf32>
    %cst_72 = arith.constant dense<0.000000e+00> : vector<2x192xf32>
    %113 = tpu.matmul %111, %61, %cst_72 {dimension_numbers = #tpu.dot_dimension_numbers<[1], [0], [0], [1], [0, 0, 1, 1], [], []>} : vector<2x64xf32>, vector<64x192xf32>, vector<2x192xf32> -> vector<2x192xf32>
    %114 = vector.broadcast %62 : vector<1x192xf32> to vector<2x192xf32>
    %115 = arith.addf %113, %114 : vector<2x192xf32>
    %116 = vector.extract_strided_slice %112 {offsets = [0, 0], sizes = [2, 128], strides = [1, 1]} : vector<2x192xf32> to vector<2x128xf32>
    %117 = vector.extract_strided_slice %115 {offsets = [0, 0], sizes = [2, 128], strides = [1, 1]} : vector<2x192xf32> to vector<2x128xf32>
    %118 = arith.addf %116, %117 : vector<2x128xf32>
    %119 = arith.negf %118 : vector<2x128xf32>
    %120 = math.exp %119 : vector<2x128xf32>
    %cst_73 = arith.constant 1.000000e+00 : f32
    %121 = vector.broadcast %cst_73 : f32 to vector<2x128xf32>
    %122 = arith.addf %121, %120 : vector<2x128xf32>
    %123 = arith.divf %121, %122 : vector<2x128xf32>
    %124 = vector.extract_strided_slice %123 {offsets = [0, 0], sizes = [2, 64], strides = [1, 1]} : vector<2x128xf32> to vector<2x64xf32>
    %125 = vector.extract_strided_slice %123 {offsets = [0, 64], sizes = [2, 64], strides = [1, 1]} : vector<2x128xf32> to vector<2x64xf32>
    %126 = vector.extract_strided_slice %112 {offsets = [0, 128], sizes = [2, 64], strides = [1, 1]} : vector<2x192xf32> to vector<2x64xf32>
    %127 = vector.extract_strided_slice %115 {offsets = [0, 128], sizes = [2, 64], strides = [1, 1]} : vector<2x192xf32> to vector<2x64xf32>
    %128 = arith.mulf %124, %127 : vector<2x64xf32>
    %129 = arith.addf %126, %128 : vector<2x64xf32>
    %130 = math.tanh %129 : vector<2x64xf32>
    %cst_74 = arith.constant 1.000000e+00 : f32
    %131 = vector.broadcast %cst_74 : f32 to vector<2x64xf32>
    %132 = arith.subf %131, %125 : vector<2x64xf32>
    %133 = arith.mulf %132, %130 : vector<2x64xf32>
    %134 = arith.mulf %125, %111 : vector<2x64xf32>
    %135 = arith.addf %133, %134 : vector<2x64xf32>
    %136 = vector.extract_strided_slice %60 {offsets = [6, 0], sizes = [2, 192], strides = [1, 1]} : vector<16x192xf32> to vector<2x192xf32>
    %cst_75 = arith.constant dense<0.000000e+00> : vector<2x192xf32>
    %137 = tpu.matmul %135, %61, %cst_75 {dimension_numbers = #tpu.dot_dimension_numbers<[1], [0], [0], [1], [0, 0, 1, 1], [], []>} : vector<2x64xf32>, vector<64x192xf32>, vector<2x192xf32> -> vector<2x192xf32>
    %138 = vector.broadcast %62 : vector<1x192xf32> to vector<2x192xf32>
    %139 = arith.addf %137, %138 : vector<2x192xf32>
    %140 = vector.extract_strided_slice %136 {offsets = [0, 0], sizes = [2, 128], strides = [1, 1]} : vector<2x192xf32> to vector<2x128xf32>
    %141 = vector.extract_strided_slice %139 {offsets = [0, 0], sizes = [2, 128], strides = [1, 1]} : vector<2x192xf32> to vector<2x128xf32>
    %142 = arith.addf %140, %141 : vector<2x128xf32>
    %143 = arith.negf %142 : vector<2x128xf32>
    %144 = math.exp %143 : vector<2x128xf32>
    %cst_76 = arith.constant 1.000000e+00 : f32
    %145 = vector.broadcast %cst_76 : f32 to vector<2x128xf32>
    %146 = arith.addf %145, %144 : vector<2x128xf32>
    %147 = arith.divf %145, %146 : vector<2x128xf32>
    %148 = vector.extract_strided_slice %147 {offsets = [0, 0], sizes = [2, 64], strides = [1, 1]} : vector<2x128xf32> to vector<2x64xf32>
    %149 = vector.extract_strided_slice %147 {offsets = [0, 64], sizes = [2, 64], strides = [1, 1]} : vector<2x128xf32> to vector<2x64xf32>
    %150 = vector.extract_strided_slice %136 {offsets = [0, 128], sizes = [2, 64], strides = [1, 1]} : vector<2x192xf32> to vector<2x64xf32>
    %151 = vector.extract_strided_slice %139 {offsets = [0, 128], sizes = [2, 64], strides = [1, 1]} : vector<2x192xf32> to vector<2x64xf32>
    %152 = arith.mulf %148, %151 : vector<2x64xf32>
    %153 = arith.addf %150, %152 : vector<2x64xf32>
    %154 = math.tanh %153 : vector<2x64xf32>
    %cst_77 = arith.constant 1.000000e+00 : f32
    %155 = vector.broadcast %cst_77 : f32 to vector<2x64xf32>
    %156 = arith.subf %155, %149 : vector<2x64xf32>
    %157 = arith.mulf %156, %154 : vector<2x64xf32>
    %158 = arith.mulf %149, %135 : vector<2x64xf32>
    %159 = arith.addf %157, %158 : vector<2x64xf32>
    %160 = vector.extract_strided_slice %60 {offsets = [8, 0], sizes = [2, 192], strides = [1, 1]} : vector<16x192xf32> to vector<2x192xf32>
    %cst_78 = arith.constant dense<0.000000e+00> : vector<2x192xf32>
    %161 = tpu.matmul %159, %61, %cst_78 {dimension_numbers = #tpu.dot_dimension_numbers<[1], [0], [0], [1], [0, 0, 1, 1], [], []>} : vector<2x64xf32>, vector<64x192xf32>, vector<2x192xf32> -> vector<2x192xf32>
    %162 = vector.broadcast %62 : vector<1x192xf32> to vector<2x192xf32>
    %163 = arith.addf %161, %162 : vector<2x192xf32>
    %164 = vector.extract_strided_slice %160 {offsets = [0, 0], sizes = [2, 128], strides = [1, 1]} : vector<2x192xf32> to vector<2x128xf32>
    %165 = vector.extract_strided_slice %163 {offsets = [0, 0], sizes = [2, 128], strides = [1, 1]} : vector<2x192xf32> to vector<2x128xf32>
    %166 = arith.addf %164, %165 : vector<2x128xf32>
    %167 = arith.negf %166 : vector<2x128xf32>
    %168 = math.exp %167 : vector<2x128xf32>
    %cst_79 = arith.constant 1.000000e+00 : f32
    %169 = vector.broadcast %cst_79 : f32 to vector<2x128xf32>
    %170 = arith.addf %169, %168 : vector<2x128xf32>
    %171 = arith.divf %169, %170 : vector<2x128xf32>
    %172 = vector.extract_strided_slice %171 {offsets = [0, 0], sizes = [2, 64], strides = [1, 1]} : vector<2x128xf32> to vector<2x64xf32>
    %173 = vector.extract_strided_slice %171 {offsets = [0, 64], sizes = [2, 64], strides = [1, 1]} : vector<2x128xf32> to vector<2x64xf32>
    %174 = vector.extract_strided_slice %160 {offsets = [0, 128], sizes = [2, 64], strides = [1, 1]} : vector<2x192xf32> to vector<2x64xf32>
    %175 = vector.extract_strided_slice %163 {offsets = [0, 128], sizes = [2, 64], strides = [1, 1]} : vector<2x192xf32> to vector<2x64xf32>
    %176 = arith.mulf %172, %175 : vector<2x64xf32>
    %177 = arith.addf %174, %176 : vector<2x64xf32>
    %178 = math.tanh %177 : vector<2x64xf32>
    %cst_80 = arith.constant 1.000000e+00 : f32
    %179 = vector.broadcast %cst_80 : f32 to vector<2x64xf32>
    %180 = arith.subf %179, %173 : vector<2x64xf32>
    %181 = arith.mulf %180, %178 : vector<2x64xf32>
    %182 = arith.mulf %173, %159 : vector<2x64xf32>
    %183 = arith.addf %181, %182 : vector<2x64xf32>
    %184 = vector.extract_strided_slice %60 {offsets = [10, 0], sizes = [2, 192], strides = [1, 1]} : vector<16x192xf32> to vector<2x192xf32>
    %cst_81 = arith.constant dense<0.000000e+00> : vector<2x192xf32>
    %185 = tpu.matmul %183, %61, %cst_81 {dimension_numbers = #tpu.dot_dimension_numbers<[1], [0], [0], [1], [0, 0, 1, 1], [], []>} : vector<2x64xf32>, vector<64x192xf32>, vector<2x192xf32> -> vector<2x192xf32>
    %186 = vector.broadcast %62 : vector<1x192xf32> to vector<2x192xf32>
    %187 = arith.addf %185, %186 : vector<2x192xf32>
    %188 = vector.extract_strided_slice %184 {offsets = [0, 0], sizes = [2, 128], strides = [1, 1]} : vector<2x192xf32> to vector<2x128xf32>
    %189 = vector.extract_strided_slice %187 {offsets = [0, 0], sizes = [2, 128], strides = [1, 1]} : vector<2x192xf32> to vector<2x128xf32>
    %190 = arith.addf %188, %189 : vector<2x128xf32>
    %191 = arith.negf %190 : vector<2x128xf32>
    %192 = math.exp %191 : vector<2x128xf32>
    %cst_82 = arith.constant 1.000000e+00 : f32
    %193 = vector.broadcast %cst_82 : f32 to vector<2x128xf32>
    %194 = arith.addf %193, %192 : vector<2x128xf32>
    %195 = arith.divf %193, %194 : vector<2x128xf32>
    %196 = vector.extract_strided_slice %195 {offsets = [0, 0], sizes = [2, 64], strides = [1, 1]} : vector<2x128xf32> to vector<2x64xf32>
    %197 = vector.extract_strided_slice %195 {offsets = [0, 64], sizes = [2, 64], strides = [1, 1]} : vector<2x128xf32> to vector<2x64xf32>
    %198 = vector.extract_strided_slice %184 {offsets = [0, 128], sizes = [2, 64], strides = [1, 1]} : vector<2x192xf32> to vector<2x64xf32>
    %199 = vector.extract_strided_slice %187 {offsets = [0, 128], sizes = [2, 64], strides = [1, 1]} : vector<2x192xf32> to vector<2x64xf32>
    %200 = arith.mulf %196, %199 : vector<2x64xf32>
    %201 = arith.addf %198, %200 : vector<2x64xf32>
    %202 = math.tanh %201 : vector<2x64xf32>
    %cst_83 = arith.constant 1.000000e+00 : f32
    %203 = vector.broadcast %cst_83 : f32 to vector<2x64xf32>
    %204 = arith.subf %203, %197 : vector<2x64xf32>
    %205 = arith.mulf %204, %202 : vector<2x64xf32>
    %206 = arith.mulf %197, %183 : vector<2x64xf32>
    %207 = arith.addf %205, %206 : vector<2x64xf32>
    %208 = vector.extract_strided_slice %60 {offsets = [12, 0], sizes = [2, 192], strides = [1, 1]} : vector<16x192xf32> to vector<2x192xf32>
    %cst_84 = arith.constant dense<0.000000e+00> : vector<2x192xf32>
    %209 = tpu.matmul %207, %61, %cst_84 {dimension_numbers = #tpu.dot_dimension_numbers<[1], [0], [0], [1], [0, 0, 1, 1], [], []>} : vector<2x64xf32>, vector<64x192xf32>, vector<2x192xf32> -> vector<2x192xf32>
    %210 = vector.broadcast %62 : vector<1x192xf32> to vector<2x192xf32>
    %211 = arith.addf %209, %210 : vector<2x192xf32>
    %212 = vector.extract_strided_slice %208 {offsets = [0, 0], sizes = [2, 128], strides = [1, 1]} : vector<2x192xf32> to vector<2x128xf32>
    %213 = vector.extract_strided_slice %211 {offsets = [0, 0], sizes = [2, 128], strides = [1, 1]} : vector<2x192xf32> to vector<2x128xf32>
    %214 = arith.addf %212, %213 : vector<2x128xf32>
    %215 = arith.negf %214 : vector<2x128xf32>
    %216 = math.exp %215 : vector<2x128xf32>
    %cst_85 = arith.constant 1.000000e+00 : f32
    %217 = vector.broadcast %cst_85 : f32 to vector<2x128xf32>
    %218 = arith.addf %217, %216 : vector<2x128xf32>
    %219 = arith.divf %217, %218 : vector<2x128xf32>
    %220 = vector.extract_strided_slice %219 {offsets = [0, 0], sizes = [2, 64], strides = [1, 1]} : vector<2x128xf32> to vector<2x64xf32>
    %221 = vector.extract_strided_slice %219 {offsets = [0, 64], sizes = [2, 64], strides = [1, 1]} : vector<2x128xf32> to vector<2x64xf32>
    %222 = vector.extract_strided_slice %208 {offsets = [0, 128], sizes = [2, 64], strides = [1, 1]} : vector<2x192xf32> to vector<2x64xf32>
    %223 = vector.extract_strided_slice %211 {offsets = [0, 128], sizes = [2, 64], strides = [1, 1]} : vector<2x192xf32> to vector<2x64xf32>
    %224 = arith.mulf %220, %223 : vector<2x64xf32>
    %225 = arith.addf %222, %224 : vector<2x64xf32>
    %226 = math.tanh %225 : vector<2x64xf32>
    %cst_86 = arith.constant 1.000000e+00 : f32
    %227 = vector.broadcast %cst_86 : f32 to vector<2x64xf32>
    %228 = arith.subf %227, %221 : vector<2x64xf32>
    %229 = arith.mulf %228, %226 : vector<2x64xf32>
    %230 = arith.mulf %221, %207 : vector<2x64xf32>
    %231 = arith.addf %229, %230 : vector<2x64xf32>
    %232 = vector.extract_strided_slice %60 {offsets = [14, 0], sizes = [2, 192], strides = [1, 1]} : vector<16x192xf32> to vector<2x192xf32>
    %cst_87 = arith.constant dense<0.000000e+00> : vector<2x192xf32>
    %233 = tpu.matmul %231, %61, %cst_87 {dimension_numbers = #tpu.dot_dimension_numbers<[1], [0], [0], [1], [0, 0, 1, 1], [], []>} : vector<2x64xf32>, vector<64x192xf32>, vector<2x192xf32> -> vector<2x192xf32>
    %234 = vector.broadcast %62 : vector<1x192xf32> to vector<2x192xf32>
    %235 = arith.addf %233, %234 : vector<2x192xf32>
    %236 = vector.extract_strided_slice %232 {offsets = [0, 0], sizes = [2, 128], strides = [1, 1]} : vector<2x192xf32> to vector<2x128xf32>
    %237 = vector.extract_strided_slice %235 {offsets = [0, 0], sizes = [2, 128], strides = [1, 1]} : vector<2x192xf32> to vector<2x128xf32>
    %238 = arith.addf %236, %237 : vector<2x128xf32>
    %239 = arith.negf %238 : vector<2x128xf32>
    %240 = math.exp %239 : vector<2x128xf32>
    %cst_88 = arith.constant 1.000000e+00 : f32
    %241 = vector.broadcast %cst_88 : f32 to vector<2x128xf32>
    %242 = arith.addf %241, %240 : vector<2x128xf32>
    %243 = arith.divf %241, %242 : vector<2x128xf32>
    %244 = vector.extract_strided_slice %243 {offsets = [0, 0], sizes = [2, 64], strides = [1, 1]} : vector<2x128xf32> to vector<2x64xf32>
    %245 = vector.extract_strided_slice %243 {offsets = [0, 64], sizes = [2, 64], strides = [1, 1]} : vector<2x128xf32> to vector<2x64xf32>
    %246 = vector.extract_strided_slice %232 {offsets = [0, 128], sizes = [2, 64], strides = [1, 1]} : vector<2x192xf32> to vector<2x64xf32>
    %247 = vector.extract_strided_slice %235 {offsets = [0, 128], sizes = [2, 64], strides = [1, 1]} : vector<2x192xf32> to vector<2x64xf32>
    %248 = arith.mulf %244, %247 : vector<2x64xf32>
    %249 = arith.addf %246, %248 : vector<2x64xf32>
    %250 = math.tanh %249 : vector<2x64xf32>
    %cst_89 = arith.constant 1.000000e+00 : f32
    %251 = vector.broadcast %cst_89 : f32 to vector<2x64xf32>
    %252 = arith.subf %251, %245 : vector<2x64xf32>
    %253 = arith.mulf %252, %250 : vector<2x64xf32>
    %254 = arith.mulf %245, %231 : vector<2x64xf32>
    %255 = arith.addf %253, %254 : vector<2x64xf32>
    %256 = tpu.concatenate %87, %111, %135, %159, %183, %207, %231, %255 in 0 : vector<2x64xf32>, vector<2x64xf32>, vector<2x64xf32>, vector<2x64xf32>, vector<2x64xf32>, vector<2x64xf32>, vector<2x64xf32>, vector<2x64xf32> -> vector<16x64xf32>
    %257 = vector.extract_strided_slice %256 {offsets = [0, 0], sizes = [16, 32], strides = [1, 1]} : vector<16x64xf32> to vector<16x32xf32>
    %258 = vector.extract_strided_slice %256 {offsets = [0, 32], sizes = [16, 32], strides = [1, 1]} : vector<16x64xf32> to vector<16x32xf32>
    %c0_90 = arith.constant 0 : index
    %c0_91 = arith.constant 0 : index
    %259 = vector.load %arg24[%c0_90, %c0_91] : memref<64x32xf32, #tpu.memory_space<vmem>>, vector<64x32xf32>
    %cst_92 = arith.constant dense<0.000000e+00> : vector<16x32xf32>
    %260 = tpu.matmul %256, %259, %cst_92 {dimension_numbers = #tpu.dot_dimension_numbers<[1], [0], [0], [1], [0, 0, 1, 1], [], []>} : vector<16x64xf32>, vector<64x32xf32>, vector<16x32xf32> -> vector<16x32xf32>
    %c0_93 = arith.constant 0 : index
    %c0_94 = arith.constant 0 : index
    %261 = vector.load %arg25[%c0_93, %c0_94] : memref<1x32xf32, #tpu.memory_space<vmem>>, vector<1x32xf32>
    %262 = vector.broadcast %261 : vector<1x32xf32> to vector<16x32xf32>
    %263 = arith.addf %260, %262 : vector<16x32xf32>
    %c0_95 = arith.constant 0 : index
    %c0_96 = arith.constant 0 : index
    %264 = vector.load %arg26[%c0_95, %c0_96] : memref<64x32xf32, #tpu.memory_space<vmem>>, vector<64x32xf32>
    %cst_97 = arith.constant dense<0.000000e+00> : vector<16x32xf32>
    %265 = tpu.matmul %256, %264, %cst_97 {dimension_numbers = #tpu.dot_dimension_numbers<[1], [0], [0], [1], [0, 0, 1, 1], [], []>} : vector<16x64xf32>, vector<64x32xf32>, vector<16x32xf32> -> vector<16x32xf32>
    %c0_98 = arith.constant 0 : index
    %c0_99 = arith.constant 0 : index
    %266 = vector.load %arg27[%c0_98, %c0_99] : memref<1x32xf32, #tpu.memory_space<vmem>>, vector<1x32xf32>
    %267 = vector.broadcast %266 : vector<1x32xf32> to vector<16x32xf32>
    %268 = arith.addf %265, %267 : vector<16x32xf32>
    %269 = arith.negf %268 : vector<16x32xf32>
    %270 = math.exp %269 : vector<16x32xf32>
    %cst_100 = arith.constant 1.000000e+00 : f32
    %271 = vector.broadcast %cst_100 : f32 to vector<16x32xf32>
    %272 = arith.addf %271, %270 : vector<16x32xf32>
    %273 = arith.divf %271, %272 : vector<16x32xf32>
    %274 = arith.mulf %273, %258 : vector<16x32xf32>
    %cst_101 = arith.constant 1.000000e+00 : f32
    %275 = vector.broadcast %cst_101 : f32 to vector<16x32xf32>
    %276 = arith.subf %275, %273 : vector<16x32xf32>
    %277 = arith.mulf %276, %257 : vector<16x32xf32>
    %278 = tpu.concatenate %274, %277 in 1 : vector<16x32xf32>, vector<16x32xf32> -> vector<16x64xf32>
    %c0_102 = arith.constant 0 : index
    %c0_103 = arith.constant 0 : index
    %279 = vector.load %arg28[%c0_102, %c0_103] : memref<64x16xf32, #tpu.memory_space<vmem>>, vector<64x16xf32>
    %cst_104 = arith.constant dense<0.000000e+00> : vector<16x16xf32>
    %280 = tpu.matmul %278, %279, %cst_104 {dimension_numbers = #tpu.dot_dimension_numbers<[1], [0], [0], [1], [0, 0, 1, 1], [], []>} : vector<16x64xf32>, vector<64x16xf32>, vector<16x16xf32> -> vector<16x16xf32>
    %c0_105 = arith.constant 0 : index
    %c0_106 = arith.constant 0 : index
    %281 = vector.load %arg29[%c0_105, %c0_106] : memref<1x16xf32, #tpu.memory_space<vmem>>, vector<1x16xf32>
    %282 = vector.broadcast %281 : vector<1x16xf32> to vector<16x16xf32>
    %283 = arith.addf %280, %282 : vector<16x16xf32>
    %284 = vector.extract_strided_slice %87 {offsets = [0, 0], sizes = [2, 32], strides = [1, 1]} : vector<2x64xf32> to vector<2x32xf32>
    %285 = vector.extract_strided_slice %111 {offsets = [0, 0], sizes = [2, 32], strides = [1, 1]} : vector<2x64xf32> to vector<2x32xf32>
    %286 = vector.extract_strided_slice %135 {offsets = [0, 0], sizes = [2, 32], strides = [1, 1]} : vector<2x64xf32> to vector<2x32xf32>
    %287 = vector.extract_strided_slice %159 {offsets = [0, 0], sizes = [2, 32], strides = [1, 1]} : vector<2x64xf32> to vector<2x32xf32>
    %288 = vector.extract_strided_slice %183 {offsets = [0, 0], sizes = [2, 32], strides = [1, 1]} : vector<2x64xf32> to vector<2x32xf32>
    %289 = vector.extract_strided_slice %207 {offsets = [0, 0], sizes = [2, 32], strides = [1, 1]} : vector<2x64xf32> to vector<2x32xf32>
    %290 = vector.extract_strided_slice %231 {offsets = [0, 0], sizes = [2, 32], strides = [1, 1]} : vector<2x64xf32> to vector<2x32xf32>
    %291 = vector.extract_strided_slice %255 {offsets = [0, 0], sizes = [2, 32], strides = [1, 1]} : vector<2x64xf32> to vector<2x32xf32>
    %292 = tpu.concatenate %284, %285, %286, %287, %288, %289, %290, %291 in 1 : vector<2x32xf32>, vector<2x32xf32>, vector<2x32xf32>, vector<2x32xf32>, vector<2x32xf32>, vector<2x32xf32>, vector<2x32xf32>, vector<2x32xf32> -> vector<2x256xf32>
    %c0_107 = arith.constant 0 : index
    %c0_108 = arith.constant 0 : index
    %293 = vector.load %arg33[%c0_107, %c0_108] : memref<2x256xf32, #tpu.memory_space<vmem>>, vector<2x256xf32>
    tpu.vector_store %arg33[%c0_107, %c0_108], %292 {strides = array<i32>} : memref<2x256xf32, #tpu.memory_space<vmem>>, vector<2x256xf32>,
    %294 = vector.extract_strided_slice %87 {offsets = [0, 32], sizes = [2, 32], strides = [1, 1]} : vector<2x64xf32> to vector<2x32xf32>
    %295 = vector.extract_strided_slice %111 {offsets = [0, 32], sizes = [2, 32], strides = [1, 1]} : vector<2x64xf32> to vector<2x32xf32>
    %296 = vector.extract_strided_slice %135 {offsets = [0, 32], sizes = [2, 32], strides = [1, 1]} : vector<2x64xf32> to vector<2x32xf32>
    %297 = vector.extract_strided_slice %159 {offsets = [0, 32], sizes = [2, 32], strides = [1, 1]} : vector<2x64xf32> to vector<2x32xf32>
    %298 = vector.extract_strided_slice %183 {offsets = [0, 32], sizes = [2, 32], strides = [1, 1]} : vector<2x64xf32> to vector<2x32xf32>
    %299 = vector.extract_strided_slice %207 {offsets = [0, 32], sizes = [2, 32], strides = [1, 1]} : vector<2x64xf32> to vector<2x32xf32>
    %300 = vector.extract_strided_slice %231 {offsets = [0, 32], sizes = [2, 32], strides = [1, 1]} : vector<2x64xf32> to vector<2x32xf32>
    %301 = vector.extract_strided_slice %255 {offsets = [0, 32], sizes = [2, 32], strides = [1, 1]} : vector<2x64xf32> to vector<2x32xf32>
    %302 = tpu.concatenate %294, %295, %296, %297, %298, %299, %300, %301 in 1 : vector<2x32xf32>, vector<2x32xf32>, vector<2x32xf32>, vector<2x32xf32>, vector<2x32xf32>, vector<2x32xf32>, vector<2x32xf32>, vector<2x32xf32> -> vector<2x256xf32>
    %c0_109 = arith.constant 0 : index
    %c0_110 = arith.constant 0 : index
    %303 = vector.load %arg34[%c0_109, %c0_110] : memref<2x256xf32, #tpu.memory_space<vmem>>, vector<2x256xf32>
    tpu.vector_store %arg34[%c0_109, %c0_110], %302 {strides = array<i32>} : memref<2x256xf32, #tpu.memory_space<vmem>>, vector<2x256xf32>,
    %304 = vector.extract_strided_slice %263 {offsets = [0, 0], sizes = [2, 16], strides = [1, 1]} : vector<16x32xf32> to vector<2x16xf32>
    %305 = vector.extract_strided_slice %263 {offsets = [2, 0], sizes = [2, 16], strides = [1, 1]} : vector<16x32xf32> to vector<2x16xf32>
    %306 = vector.extract_strided_slice %263 {offsets = [4, 0], sizes = [2, 16], strides = [1, 1]} : vector<16x32xf32> to vector<2x16xf32>
    %307 = vector.extract_strided_slice %263 {offsets = [6, 0], sizes = [2, 16], strides = [1, 1]} : vector<16x32xf32> to vector<2x16xf32>
    %308 = vector.extract_strided_slice %263 {offsets = [8, 0], sizes = [2, 16], strides = [1, 1]} : vector<16x32xf32> to vector<2x16xf32>
    %309 = vector.extract_strided_slice %263 {offsets = [10, 0], sizes = [2, 16], strides = [1, 1]} : vector<16x32xf32> to vector<2x16xf32>
    %310 = vector.extract_strided_slice %263 {offsets = [12, 0], sizes = [2, 16], strides = [1, 1]} : vector<16x32xf32> to vector<2x16xf32>
    %311 = vector.extract_strided_slice %263 {offsets = [14, 0], sizes = [2, 16], strides = [1, 1]} : vector<16x32xf32> to vector<2x16xf32>
    %312 = tpu.concatenate %304, %305, %306, %307, %308, %309, %310, %311 in 1 : vector<2x16xf32>, vector<2x16xf32>, vector<2x16xf32>, vector<2x16xf32>, vector<2x16xf32>, vector<2x16xf32>, vector<2x16xf32>, vector<2x16xf32> -> vector<2x128xf32>
    %c0_111 = arith.constant 0 : index
    %c0_112 = arith.constant 0 : index
    %313 = vector.load %arg30[%c0_111, %c0_112] : memref<2x128xf32, #tpu.memory_space<vmem>>, vector<2x128xf32>
    tpu.vector_store %arg30[%c0_111, %c0_112], %312 {strides = array<i32>} : memref<2x128xf32, #tpu.memory_space<vmem>>, vector<2x128xf32>,
    %314 = vector.extract_strided_slice %263 {offsets = [0, 16], sizes = [2, 16], strides = [1, 1]} : vector<16x32xf32> to vector<2x16xf32>
    %315 = vector.extract_strided_slice %263 {offsets = [2, 16], sizes = [2, 16], strides = [1, 1]} : vector<16x32xf32> to vector<2x16xf32>
    %316 = vector.extract_strided_slice %263 {offsets = [4, 16], sizes = [2, 16], strides = [1, 1]} : vector<16x32xf32> to vector<2x16xf32>
    %317 = vector.extract_strided_slice %263 {offsets = [6, 16], sizes = [2, 16], strides = [1, 1]} : vector<16x32xf32> to vector<2x16xf32>
    %318 = vector.extract_strided_slice %263 {offsets = [8, 16], sizes = [2, 16], strides = [1, 1]} : vector<16x32xf32> to vector<2x16xf32>
    %319 = vector.extract_strided_slice %263 {offsets = [10, 16], sizes = [2, 16], strides = [1, 1]} : vector<16x32xf32> to vector<2x16xf32>
    %320 = vector.extract_strided_slice %263 {offsets = [12, 16], sizes = [2, 16], strides = [1, 1]} : vector<16x32xf32> to vector<2x16xf32>
    %321 = vector.extract_strided_slice %263 {offsets = [14, 16], sizes = [2, 16], strides = [1, 1]} : vector<16x32xf32> to vector<2x16xf32>
    %322 = tpu.concatenate %314, %315, %316, %317, %318, %319, %320, %321 in 1 : vector<2x16xf32>, vector<2x16xf32>, vector<2x16xf32>, vector<2x16xf32>, vector<2x16xf32>, vector<2x16xf32>, vector<2x16xf32>, vector<2x16xf32> -> vector<2x128xf32>
    %c0_113 = arith.constant 0 : index
    %c0_114 = arith.constant 0 : index
    %323 = vector.load %arg31[%c0_113, %c0_114] : memref<2x128xf32, #tpu.memory_space<vmem>>, vector<2x128xf32>
    tpu.vector_store %arg31[%c0_113, %c0_114], %322 {strides = array<i32>} : memref<2x128xf32, #tpu.memory_space<vmem>>, vector<2x128xf32>,
    %324 = vector.extract_strided_slice %283 {offsets = [0, 0], sizes = [2, 16], strides = [1, 1]} : vector<16x16xf32> to vector<2x16xf32>
    %325 = vector.extract_strided_slice %283 {offsets = [2, 0], sizes = [2, 16], strides = [1, 1]} : vector<16x16xf32> to vector<2x16xf32>
    %326 = vector.extract_strided_slice %283 {offsets = [4, 0], sizes = [2, 16], strides = [1, 1]} : vector<16x16xf32> to vector<2x16xf32>
    %327 = vector.extract_strided_slice %283 {offsets = [6, 0], sizes = [2, 16], strides = [1, 1]} : vector<16x16xf32> to vector<2x16xf32>
    %328 = vector.extract_strided_slice %283 {offsets = [8, 0], sizes = [2, 16], strides = [1, 1]} : vector<16x16xf32> to vector<2x16xf32>
    %329 = vector.extract_strided_slice %283 {offsets = [10, 0], sizes = [2, 16], strides = [1, 1]} : vector<16x16xf32> to vector<2x16xf32>
    %330 = vector.extract_strided_slice %283 {offsets = [12, 0], sizes = [2, 16], strides = [1, 1]} : vector<16x16xf32> to vector<2x16xf32>
    %331 = vector.extract_strided_slice %283 {offsets = [14, 0], sizes = [2, 16], strides = [1, 1]} : vector<16x16xf32> to vector<2x16xf32>
    %332 = tpu.concatenate %324, %325, %326, %327, %328, %329, %330, %331 in 1 : vector<2x16xf32>, vector<2x16xf32>, vector<2x16xf32>, vector<2x16xf32>, vector<2x16xf32>, vector<2x16xf32>, vector<2x16xf32>, vector<2x16xf32> -> vector<2x128xf32>
    %c0_115 = arith.constant 0 : index
    %c0_116 = arith.constant 0 : index
    %333 = vector.load %arg32[%c0_115, %c0_116] : memref<2x128xf32, #tpu.memory_space<vmem>>, vector<2x128xf32>
    tpu.vector_store %arg32[%c0_115, %c0_116], %332 {strides = array<i32>} : memref<2x128xf32, #tpu.memory_space<vmem>>, vector<2x128xf32>,
    return
  }
  func.func @transform_0(%arg0: i32) -> (i32, i32) {
    %c0_i32 = arith.constant 0 : i32
    %c0_i32_0 = arith.constant 0 : i32
    %c0_i32_1 = arith.constant 0 : i32
    return %c0_i32, %c0_i32_0 : i32, i32
  }
  func.func @transform_1(%arg0: i32) -> (i32, i32) {
    %c0_i32 = arith.constant 0 : i32
    %c0_i32_0 = arith.constant 0 : i32
    %c0_i32_1 = arith.constant 0 : i32
    return %c0_i32, %c0_i32_0 : i32, i32
  }
  func.func @transform_2(%arg0: i32) -> (i32, i32) {
    %c0_i32 = arith.constant 0 : i32
    %c0_i32_0 = arith.constant 0 : i32
    %c0_i32_1 = arith.constant 0 : i32
    return %c0_i32, %c0_i32_0 : i32, i32
  }
  func.func @transform_3(%arg0: i32) -> (i32, i32) {
    %c0_i32 = arith.constant 0 : i32
    %c0_i32_0 = arith.constant 0 : i32
    %c0_i32_1 = arith.constant 0 : i32
    return %c0_i32, %c0_i32_0 : i32, i32
  }
  func.func @transform_4(%arg0: i32) -> (i32, i32) {
    %c0_i32 = arith.constant 0 : i32
    %c0_i32_0 = arith.constant 0 : i32
    %c0_i32_1 = arith.constant 0 : i32
    return %c0_i32, %c0_i32_0 : i32, i32
  }
  func.func @transform_5(%arg0: i32) -> (i32, i32) {
    %c0_i32 = arith.constant 0 : i32
    %c0_i32_0 = arith.constant 0 : i32
    %c0_i32_1 = arith.constant 0 : i32
    return %c0_i32, %c0_i32_0 : i32, i32
  }
  func.func @transform_6(%arg0: i32) -> (i32, i32) {
    %c0_i32 = arith.constant 0 : i32
    %c0_i32_0 = arith.constant 0 : i32
    %c0_i32_1 = arith.constant 0 : i32
    return %c0_i32, %c0_i32_0 : i32, i32
  }
  func.func @transform_7(%arg0: i32) -> (i32, i32) {
    %c0_i32 = arith.constant 0 : i32
    %c0_i32_0 = arith.constant 0 : i32
    %c0_i32_1 = arith.constant 0 : i32
    return %c0_i32, %c0_i32_0 : i32, i32
  }
  func.func @transform_8(%arg0: i32) -> (i32, i32) {
    %c0_i32 = arith.constant 0 : i32
    %c0_i32_0 = arith.constant 0 : i32
    %c0_i32_1 = arith.constant 0 : i32
    return %c0_i32, %c0_i32_0 : i32, i32
  }
  func.func @transform_9(%arg0: i32) -> (i32, i32) {
    %c0_i32 = arith.constant 0 : i32
    %c0_i32_0 = arith.constant 0 : i32
    %c0_i32_1 = arith.constant 0 : i32
    return %c0_i32, %c0_i32_0 : i32, i32
  }
  func.func @transform_10(%arg0: i32) -> (i32, i32) {
    %c0_i32 = arith.constant 0 : i32
    %c0_i32_0 = arith.constant 0 : i32
    %c0_i32_1 = arith.constant 0 : i32
    return %c0_i32, %c0_i32_0 : i32, i32
  }
  func.func @transform_11(%arg0: i32) -> (i32, i32) {
    %c0_i32 = arith.constant 0 : i32
    %c0_i32_0 = arith.constant 0 : i32
    %c0_i32_1 = arith.constant 0 : i32
    return %c0_i32, %c0_i32_0 : i32, i32
  }
  func.func @transform_12(%arg0: i32) -> (i32, i32) {
    %c0_i32 = arith.constant 0 : i32
    %c0_i32_0 = arith.constant 0 : i32
    %c0_i32_1 = arith.constant 0 : i32
    return %c0_i32, %c0_i32_0 : i32, i32
  }
  func.func @transform_13(%arg0: i32) -> (i32, i32) {
    %c0_i32 = arith.constant 0 : i32
    %c0_i32_0 = arith.constant 0 : i32
    %c0_i32_1 = arith.constant 0 : i32
    return %c0_i32, %c0_i32_0 : i32, i32
  }
  func.func @transform_14(%arg0: i32) -> (i32, i32) {
    %c0_i32 = arith.constant 0 : i32
    %c0_i32_0 = arith.constant 0 : i32
    %c0_i32_1 = arith.constant 0 : i32
    return %c0_i32, %c0_i32_0 : i32, i32
  }
  func.func @transform_15(%arg0: i32) -> (i32, i32) {
    %c0_i32 = arith.constant 0 : i32
    %c0_i32_0 = arith.constant 0 : i32
    %c0_i32_1 = arith.constant 0 : i32
    return %c0_i32, %c0_i32_0 : i32, i32
  }
  func.func @transform_16(%arg0: i32) -> (i32, i32) {
    %c0_i32 = arith.constant 0 : i32
    %c0_i32_0 = arith.constant 0 : i32
    %c0_i32_1 = arith.constant 0 : i32
    return %c0_i32, %c0_i32_0 : i32, i32
  }
  func.func @transform_17(%arg0: i32) -> (i32, i32) {
    %c0_i32 = arith.constant 0 : i32
    %c0_i32_0 = arith.constant 0 : i32
    %c0_i32_1 = arith.constant 0 : i32
    return %c0_i32, %c0_i32_0 : i32, i32
  }
  func.func @transform_18(%arg0: i32) -> (i32, i32) {
    %c0_i32 = arith.constant 0 : i32
    %c0_i32_0 = arith.constant 0 : i32
    %c0_i32_1 = arith.constant 0 : i32
    return %c0_i32, %c0_i32_0 : i32, i32
  }
  func.func @transform_19(%arg0: i32) -> (i32, i32) {
    %c0_i32 = arith.constant 0 : i32
    %c0_i32_0 = arith.constant 0 : i32
    %c0_i32_1 = arith.constant 0 : i32
    return %c0_i32, %c0_i32_0 : i32, i32
  }
  func.func @transform_20(%arg0: i32) -> (i32, i32) {
    %c0_i32 = arith.constant 0 : i32
    %c0_i32_0 = arith.constant 0 : i32
    %c0_i32_1 = arith.constant 0 : i32
    return %c0_i32, %c0_i32_0 : i32, i32
  }
  func.func @transform_21(%arg0: i32) -> (i32, i32) {
    %c0_i32 = arith.constant 0 : i32
    %c0_i32_0 = arith.constant 0 : i32
    %c0_i32_1 = arith.constant 0 : i32
    return %c0_i32, %c0_i32_0 : i32, i32
  }
  func.func @transform_22(%arg0: i32) -> (i32, i32) {
    %c0_i32 = arith.constant 0 : i32
    %c0_i32_0 = arith.constant 0 : i32
    %c0_i32_1 = arith.constant 0 : i32
    return %c0_i32, %c0_i32_0 : i32, i32
  }
  func.func @transform_23(%arg0: i32) -> (i32, i32) {
    %c0_i32 = arith.constant 0 : i32
    %c0_i32_0 = arith.constant 0 : i32
    %c0_i32_1 = arith.constant 0 : i32
    return %c0_i32, %c0_i32_0 : i32, i32
  }
  func.func @transform_24(%arg0: i32) -> (i32, i32) {
    %c0_i32 = arith.constant 0 : i32
    %c0_i32_0 = arith.constant 0 : i32
    %c0_i32_1 = arith.constant 0 : i32
    return %c0_i32, %c0_i32_0 : i32, i32
  }
  func.func @transform_25(%arg0: i32) -> (i32, i32) {
    %c0_i32 = arith.constant 0 : i32
    %c0_i32_0 = arith.constant 0 : i32
    %c0_i32_1 = arith.constant 0 : i32
    return %c0_i32, %c0_i32_0 : i32, i32
  }
  func.func @transform_26(%arg0: i32) -> (i32, i32) {
    %c0_i32 = arith.constant 0 : i32
    %c0_i32_0 = arith.constant 0 : i32
    %c0_i32_1 = arith.constant 0 : i32
    return %c0_i32, %c0_i32_0 : i32, i32
  }
  func.func @transform_27(%arg0: i32) -> (i32, i32) {
    %c0_i32 = arith.constant 0 : i32
    %c0_i32_0 = arith.constant 0 : i32
    %c0_i32_1 = arith.constant 0 : i32
    return %c0_i32, %c0_i32_0 : i32, i32
  }
  func.func @transform_28(%arg0: i32) -> (i32, i32) {
    %c0_i32 = arith.constant 0 : i32
    %c0_i32_0 = arith.constant 0 : i32
    %c0_i32_1 = arith.constant 0 : i32
    return %c0_i32, %c0_i32_0 : i32, i32
  }
  func.func @transform_29(%arg0: i32) -> (i32, i32) {
    %c0_i32 = arith.constant 0 : i32
    %c0_i32_0 = arith.constant 0 : i32
    %c0_i32_1 = arith.constant 0 : i32
    return %c0_i32, %c0_i32_0 : i32, i32
  }
  func.func @transform_30(%arg0: i32) -> (i32, i32) {
    %c0_i32 = arith.constant 0 : i32
    %c0_i32_0 = arith.constant 0 : i32
    %c0_i32_1 = arith.constant 0 : i32
    return %c0_i32, %c0_i32_0 : i32, i32
  }
  func.func @transform_31(%arg0: i32) -> (i32, i32) {
    %c0_i32 = arith.constant 0 : i32
    %c0_i32_0 = arith.constant 0 : i32
    %c0_i32_1 = arith.constant 0 : i32
    return %c0_i32, %c0_i32_0 : i32, i32
  }
  func.func @transform_32(%arg0: i32) -> (i32, i32) {
    %c0_i32 = arith.constant 0 : i32
    %c0_i32_0 = arith.constant 0 : i32
    %c0_i32_1 = arith.constant 0 : i32
    return %c0_i32, %c0_i32_0 : i32, i32
  }
  func.func @transform_33(%arg0: i32) -> (i32, i32) {
    %c0_i32 = arith.constant 0 : i32
    %c0_i32_0 = arith.constant 0 : i32
    %c0_i32_1 = arith.constant 0 : i32
    return %c0_i32, %c0_i32_0 : i32, i32
  }
}

</mosaic_0001>

<bundles_post_ra>
// kernel: dkt_forward.1
= control target key start
LH: loop header
LB: loop body
LE: loop exit
PB: predicated region body
PF: predicated region fallthrough
CT: control target
= control target key end

     0   :  { %s4154_s3 = smov 5   ;;  %s4155_s7 = smov 1   ;;  %vm150_vm0 = vcmask 261120   ;;  %vm1575_vm1 = vcmask 130048   ;;  %vm1877_vm2 = vcmask 523264   ;;  %vm2682_vm3 = vcmask 1041408   ;;  %s4803_s0 = inlined_call_operand.smem [shape: u32[34], index: -1, kind: input, shape index: {}] }
   0x1   :  { %s3214_s6 = sld [smem:[%s4803_s0 + %s4154_s3]]   ;;  %s4156_s11 = smov 2   ;;  %vm2684_vm4 = vcmask 1043456   ;;  %vm2686_vm5 = vcmask 1045504   ;;  %vm3114_vm6 = vcmask 392192   ;;  %vm3033_vm7 = vcmask 785408  }
   0x2   :  { %s3210_s10 = sld [smem:[%s4803_s0 + %s4155_s7]]   ;;  %s4157_s15 = smov 7   ;;  %vm3117_vm8 = vcmask 654336   ;;  %vm3120_vm9 = vcmask 916480  }
   0x3   :  { %s4223_s14 = sld [smem:[%s4803_s0 + %s4156_s11]]   ;;  %s4158_s19 = smov 6  }
   0x4   :  { %s4230_s18 = sld [smem:[%s4803_s0 + %s4157_s15]]   ;;  %s4159_s23 = smov 9  }
   0x5   :  { %s3215_s22 = sld [smem:[%s4803_s0 + %s4158_s19]]   ;;  %s4160_s27 = smov 8  }
   0x6   :  { %s3218_s26 = sld [smem:[%s4803_s0 + %s4159_s23]]   ;;  %s4161_s1 = smov 3  }
   0x7   :  { %v139_v0 = vld [vmem:[%s3214_s6] sm:$0xff]  ;;  %v140_v1 = vld [vmem:[%s3214_s6 + $0x8] sm:$0xff]  ;;  %v141_v2 = vld [vmem:[%s3214_s6 + $0x10] sm:$0xff]  ;;  %s3217_s30 = sld [smem:[%s4803_s0 + %s4160_s27]]   ;;  %s4162_s5 = smov 11  }
   0x8   :  { %v3739_v3 = vpack.c.bf16 %v140_v1, %v139_v0  ;;  %v142_v4 = vld [vmem:[%s3214_s6 + $0x18] sm:$0xff]  ;;  %v4204_v5 = vld [vmem:[%s3210_s10] sm:$0xff]  ;;  %v4208_v7 = vld [vmem:[%s3210_s10 + $0x8] sm:$0xff]  ;;  %s3212_s4 = sld [smem:[%s4803_s0 + %s4161_s1]]   ;;  %s4163_s9 = smov 13  }
   0x9   :  { %v3743_v6 = vpack.c.bf16 %v142_v4, %v141_v2  ;;  %3489 = vmatprep.mubr.msk.f32.mxu0 %vm150_vm0, %v4204_v5  ;;  %v4210_v8 = vld [vmem:[%s3210_s10 + $0x10] sm:$0xff]  ;;  %v4216_v9 = vld [vmem:[%s3210_s10 + $0x18] sm:$0xff]  ;;  %v135_v10 = vld [vmem:[%s4223_s14] sm:$0xff]  ;;  %s3220_s8 = sld [smem:[%s4803_s0 + %s4162_s5]]   ;;  %s4164_s13 = smov 10  }
   0xa   :  { %3740 = vmatprep.subr.bf16.mxu0 %v3739_v3  ;;  %3503 = vmatprep.mubr.msk.f32.mxu1 %vm150_vm0, %v135_v10  ;;  %v349_v11 = vld [vmem:[%s4230_s18] sm:$0xff]  ;;  %v350_v12 = vld [vmem:[%s4230_s18 + $0x8] sm:$0xff]  ;;  %v4241_v26 = vld [vmem:[%s4223_s14 + $0x10] sm:$0xff]  ;;  %s3222_s12 = sld [smem:[%s4803_s0 + %s4163_s9]]   ;;  %s4165_s17 = smov 15  }
   0xb   :  { %3742 = vmatpush3.bf16.msra.mxu0 %v3739_v3  ;;  %v3755_v13 = vpack.c.bf16 %v350_v12, %v349_v11  ;;  %v3243_v14 = vld [vmem:[%s3215_s22] ss:$0 sm:$0xff]  ;;  %v4238_v25 = vld [vmem:[%s4223_s14 + $0x8] sm:$0xff]  ;;  %v4248_v27 = vld [vmem:[%s4223_s14 + $0x18] sm:$0xff]  ;;  %s3219_s16 = sld [smem:[%s4803_s0 + %s4164_s13]]   ;;  %s4166_s21 = smov 4  }
   0xc   :  { %3744 = vmatprep.subr.bf16.mxu0 %v3743_v6  ;;  %v351_v28 = vld [vmem:[%s4230_s18 + $0x10] sm:$0xff]  ;;  %v352_v29 = vld [vmem:[%s4230_s18 + $0x18] sm:$0xff]  ;;  %v546_v31 = vld [vmem:[%s3218_s26] sm:$0xff]  ;;  %s3224_s20 = sld [smem:[%s4803_s0 + %s4165_s17]]   ;;  %s4167_s25 = smov 12  }
   0xd   :  { %v3759_v30 = vpack.c.bf16 %v352_v29, %v351_v28  ;;  %v547_v32 = vld [vmem:[%s3218_s26 + $0x8] sm:$0xff]  ;;  %v548_v35 = vld [vmem:[%s3218_s26 + $0x10] sm:$0xff]  ;;  %v549_v36 = vld [vmem:[%s3218_s26 + $0x18] sm:$0xff]  ;;  %s3213_s24 = sld [smem:[%s4803_s0 + %s4166_s21]]   ;;  %s4168_s29 = smov 14  }
   0xe   :  { %v3771_v33 = vpack.c.bf16 %v547_v32, %v546_v31  ;;  %v3775_v40 = vpack.c.bf16 %v549_v36, %v548_v35  ;;  %v3252_v45 = vld [vmem:[%s3217_s30] ss:$0 sm:$0xff]  ;;  %v4283_v63 = vld [vmem:[%s3212_s4 + $0x8] sm:$0xff]  ;;  %v4285_v0 = vld [vmem:[%s3212_s4 + $0x10] sm:$0xff]  ;;  %s3221_s28 = sld [smem:[%s4803_s0 + %s4167_s25]]   ;;  %s4169_s6 = smov 16  }
   0xf   :  { %3746 = vmatpush3.bf16.msra.mxu0 %v3743_v6  ;;  %v542_v62 = vld [vmem:[%s3212_s4] sm:$0xff]  ;;  %v4291_v1 = vld [vmem:[%s3212_s4 + $0x18] sm:$0xff]  ;;  %v744_v3 = vld [vmem:[%s3220_s8 + $0x8] sm:$0xff]  ;;  %s3223_s2 = sld [smem:[%s4803_s0 + %s4168_s29]]   ;;  %s4170_s10 = smov 18  }
  0x10   :  { %3756 = vmatprep.subr.bf16.mxu0 %v3755_v13  ;;  %v743_v2 = vld [vmem:[%s3220_s8] sm:$0xff]  ;;  %v745_v6 = vld [vmem:[%s3220_s8 + $0x10] sm:$0xff]  ;;  %s1_s5 = sld [smem:[%s4803_s0]]   ;;  %s4171_s14 = smov 20  }
  0x11   :  { %v3787_v4 = vpack.c.bf16 %v744_v3, %v743_v2  ;;  %v940_v12 = vld [vmem:[%s3222_s12] sm:$0xff]  ;;  %s3225_s9 = sld [smem:[%s4803_s0 + %s4169_s6]]   ;;  %s4172_s18 = smov 17  }
  0x12   :  { %3490 = vmatmul.mubr.msk.f32.vlgmr.msra.gmra.mrb[0].mxu0 %vm150_vm0, %v4208_v7  ;;  %v1137_v35 = vld [vmem:[%s3224_s20] sm:$0xff]  ;;  %v1138_v36 = vld [vmem:[%s3224_s20 + $0x8] sm:$0xff]  ;;  %s3227_s13 = sld [smem:[%s4803_s0 + %s4170_s10]]   ;;  %s4174_s22 = smov 19  }
  0x13   :  { %3492 = vmatprep.mubr.msk.f32.mxu0 %vm150_vm0, %v4210_v8  ;;  %3758 = vmatpush3.bf16.msra.mxu0 %v3755_v13  ;;  %v941_v13 = vld [vmem:[%s3222_s12 + $0x8] sm:$0xff]  ;;  %s4382_s17 = sld [smem:[%s4803_s0 + %s4171_s14]]   ;;  %s4175_s26 = smov 22  }
  0x14   :  { %3760 = vmatprep.subr.bf16.mxu0 %v3759_v30  ;;  %s4387_s21 = sld [smem:[%s4803_s0 + %s4172_s18]]   ;;  %s4176_s30 = smov 21  }
  0x15   :  { %s3228_s25 = sld [smem:[%s4803_s0 + %s4174_s22]]   ;;  %s4177_s4 = smov 64  }
  0x16   :  { %3493 = vmatmul.mubr.msk.f32.gmra.mrb[2].mxu0 %vm150_vm0, %v4216_v9  ;;  %s3231_s29 = sld [smem:[%s4803_s0 + %s4175_s26]]   ;;  %s4179_s7 = smov 23  }
  0x17   :  { %3762 = vmatpush3.bf16.msra.mxu0 %v3759_v30  ;;  %s3230_s3 = sld [smem:[%s4803_s0 + %s4176_s30]]   ;;  %s4180_s11 = smov 25  }
  0x18   :  { %3772 = vmatprep.subr.bf16.mxu0 %v3771_v33  ;;  %s3232_s10 = sld [smem:[%s4803_s0 + %s4179_s7]]   ;;  %s4181_s15 = smov 27  }
  0x19   :  { %s3234_s14 = sld [smem:[%s4803_s0 + %s4180_s11]]   ;;  %s4182_s19 = smov 26  }
  0x1a   :  { %s4675_s18 = sld [smem:[%s4803_s0 + %s4181_s15]]   ;;  %s4183_s23 = smov 24  }
  0x1b   :  { %s3235_s22 = sld [smem:[%s4803_s0 + %s4182_s19]]   ;;  %s4184_s27 = smov 112  }
  0x1c   :  { %s3233_s26 = sld [smem:[%s4803_s0 + %s4183_s23]]   ;;  %s4187_s30 = smov 80  }
  0x1d   :  { %s4188_s1 = smov 33   ;;  %s4189_s11 = smov 28  }
  0x1e   :  { %s3242_s7 = sld [smem:[%s4803_s0 + %s4188_s1]]  }
  0xe5   :  { %v3491_v15 = vpop.f32.mrb[0].mxu0 }
  0xe6   :  { %v235_v16 = vadd.f32 %v3491_v15, %v3243_v14  ;;  %v229_v17 = vpop.f32.mrb[1].mxu0 }
  0xe7   :  { %v230_v18 = vadd.f32 %v3243_v14, %v229_v17 }
  0xe9   :  { %v3494_v19 = vpop.f32.mrb[2].mxu0  ;;  %v3747_v20 = vpack.c.bf16 %v235_v16, %v230_v18 }
  0xea   :  { %v245_v21 = vadd.f32 %v3494_v19, %v3243_v14  ;;  %v239_v22 = vpop.f32.mrb[3].mxu0 }
  0xeb   :  { %v240_v23 = vadd.f32 %v3243_v14, %v239_v22  ;;  %3748 = vmatprep.subr.bf16.mxu1 %v3747_v20  ;;  %v3803_v14 = vpack.c.bf16 %v941_v13, %v940_v12 }
  0xec   :  { %3750 = vmatpush3.bf16.msra.mxu1 %v3747_v20 }
  0xed   :  { %v3751_v24 = vpack.c.bf16 %v245_v21, %v240_v23  ;;  %v3265_v21 = vld [vmem:[%s3219_s16] ss:$0 sm:$0xff]  ;;  %s4191_s16 = smov 30  }
  0xee   :  { %s3239_s19 = sld [smem:[%s4803_s0 + %s4191_s16]]  }
  0xef   :  { %3752 = vmatprep.subr.bf16.mxu1 %v3751_v24 }
  0xf0   :  { %3754 = vmatpush3.bf16.msra.mxu1 %v3751_v24 }
  0xf3   :  { %3504 = vmatmul.mubr.msk.f32.vlgmr.msra.gmra.mrb[0].mxu1 %vm150_vm0, %v4238_v25 }
  0xf4   :  { %3506 = vmatprep.mubr.msk.f32.mxu1 %vm150_vm0, %v4241_v26 }
  0xf7   :  { %3507 = vmatmul.mubr.msk.f32.gmra.mrb[2].mxu1 %vm150_vm0, %v4248_v27 }
  0xf8   :  { %3531 = vmatprep.mubr.msk.f32.mxu1 %vm150_vm0, %v135_v10  ;;  %v746_v10 = vld [vmem:[%s3220_s8 + $0x18] sm:$0xff] }
  0xf9   :  { %v3791_v11 = vpack.c.bf16 %v746_v10, %v745_v6 }
 0x1c6   :  { %v3505_v34 = vpop.f32.mrb[0].mxu1 }
 0x1c7   :  { %v326_v37 = vpop.f32.mrb[1].mxu1  ;;  %v346_v39 = vmax.f32 %v3505_v34, 0.0 }
 0x1c8   :  { %v345_v38 = vmax.f32 %v326_v37, 0.0 }
 0x1ca   :  { %v3508_v41 = vpop.f32.mrb[2].mxu1  ;;  %3517 = vmatprep.mubr.msk.f32.mxu0 %vm150_vm0, %v345_v38 }
 0x1cb   :  { %v336_v42 = vpop.f32.mrb[3].mxu1  ;;  %3518 = vmatmul.mubr.msk.f32.vlgmr.msra.gmra.mrb[4].mxu0 %vm150_vm0, %v346_v39  ;;  %v348_v44 = vmax.f32 %v3508_v41, 0.0  ;;  %v3819_v39 = vpack.c.bf16 %v1138_v36, %v1137_v35  ;;  %v1140_v41 = vld [vmem:[%s3224_s20 + $0x18] sm:$0xff]  ;;  %v1572_v36 = vld [vmem:[%s3227_s13 + $0x8] sm:$0xff] }
 0x1cc   :  { %v347_v43 = vmax.f32 %v336_v42, 0.0  ;;  %3774 = vmatpush3.bf16.msra.mxu0 %v3771_v33 }
 0x1cd   :  { %3776 = vmatprep.subr.bf16.mxu0 %v3775_v40 }
 0x1ce   :  { %3520 = vmatprep.mubr.msk.f32.mxu0 %vm150_vm0, %v347_v43 }
 0x1cf   :  { %3521 = vmatmul.mubr.msk.f32.gmra.mrb[6].mxu0 %vm150_vm0, %v348_v44 }
 0x1d0   :  { %3778 = vmatpush3.bf16.msra.mxu0 %v3775_v40  ;;  %3545 = vmatprep.mubr.msk.f32.mxu0 %vm150_vm0, %v4204_v5  ;;  %v1139_v40 = vld [vmem:[%s3224_s20 + $0x10] sm:$0xff]  ;;  %s4192_s20 = smov 31  }
 0x1d1   :  { %3788 = vmatprep.subr.bf16.mxu0 %v3787_v4  ;;  %v3823_v42 = vpack.c.bf16 %v1140_v41, %v1139_v40  ;;  %v1571_v41 = vld [vmem:[%s3227_s13] sm:$0xff]  ;;  %s3240_s23 = sld [smem:[%s4803_s0 + %s4192_s20]]  }
 0x1d3   :  { %3546 = vmatmul.mubr.msk.f32.vlgmr.msra.gmra.mrb[8].mxu0 %vm150_vm0, %v4208_v7 }
 0x1d4   :  { %3548 = vmatprep.mubr.msk.f32.mxu0 %vm150_vm0, %v4210_v8  ;;  %3790 = vmatpush3.bf16.msra.mxu0 %v3787_v4 }
 0x1d5   :  { %3792 = vmatprep.subr.bf16.mxu0 %v3791_v11 }
 0x1d7   :  { %3549 = vmatmul.mubr.msk.f32.gmra.mrb[10].mxu0 %vm150_vm0, %v4216_v9 }
 0x1d8   :  { %3794 = vmatpush3.bf16.msra.mxu0 %v3791_v11 }
 0x1d9   :  { %3804 = vmatprep.subr.bf16.mxu0 %v3803_v14 }
 0x29e   :  { %v3519_v46 = vpop.f32.mrb[4].mxu0 }
 0x29f   :  { %v444_v47 = vadd.f32 %v3519_v46, %v3252_v45  ;;  %v438_v48 = vpop.f32.mrb[5].mxu0 }
 0x2a0   :  { %v439_v49 = vadd.f32 %v3252_v45, %v438_v48 }
 0x2a2   :  { %v3763_v50 = vpack.c.bf16 %v444_v47, %v439_v49  ;;  %v3522_v51 = vpop.f32.mrb[6].mxu0 }
 0x2a3   :  { %v454_v52 = vadd.f32 %v3522_v51, %v3252_v45  ;;  %v448_v53 = vpop.f32.mrb[7].mxu0  ;;  %v936_v51 = vld [vmem:[%s3213_s24] sm:$0xff] }
 0x2a4   :  { %v449_v54 = vadd.f32 %v3252_v45, %v448_v53  ;;  %3764 = vmatprep.subr.bf16.mxu1 %v3763_v50  ;;  %v4337_v53 = vld [vmem:[%s3213_s24 + $0x10] sm:$0xff] }
 0x2a5   :  { %3766 = vmatpush3.bf16.msra.mxu1 %v3763_v50 }
 0x2a6   :  { %v3767_v55 = vpack.c.bf16 %v454_v52, %v449_v54  ;;  %v3547_v56 = vpop.f32.mrb[8].mxu0  ;;  %v4335_v52 = vld [vmem:[%s3213_s24 + $0x8] sm:$0xff]  ;;  %v939_v54 = vld [vmem:[%s3213_s24 + $0x18] sm:$0xff] }
 0x2a7   :  { %v616_v57 = vpop.f32.mrb[9].mxu0 }
 0x2a8   :  { %3768 = vmatprep.subr.bf16.mxu1 %v3767_v55  ;;  %v3779_v58 = vpack.c.bf16 %v3547_v56, %v616_v57 }
 0x2a9   :  { %3770 = vmatpush3.bf16.msra.mxu1 %v3767_v55  ;;  %v3274_v55 = vld [vmem:[%s3221_s28] ss:$0 sm:$0xff]  ;;  %s4185_s28 = smov 96  }
 0x2aa   :  { %v3550_v59 = vpop.f32.mrb[10].mxu0  ;;  %3780 = vmatprep.subr.bf16.mxu1 %v3779_v58 }
 0x2ab   :  { %v626_v60 = vpop.f32.mrb[11].mxu0 }
 0x2ac   :  { %3532 = vmatmul.mubr.msk.f32.vlgmr.msra.gmra.mrb[4].mxu1 %vm150_vm0, %v4238_v25  ;;  %v3783_v61 = vpack.c.bf16 %v3550_v59, %v626_v60 }
 0x2ad   :  { %3782 = vmatpush3.bf16.msra.mxu1 %v3779_v58  ;;  %3534 = vmatprep.mubr.msk.f32.mxu1 %vm150_vm0, %v4241_v26  ;;  %v942_v26 = vld [vmem:[%s3222_s12 + $0x10] sm:$0xff] }
 0x2ae   :  { %3784 = vmatprep.subr.bf16.mxu1 %v3783_v61 }
 0x2b0   :  { %3535 = vmatmul.mubr.msk.f32.gmra.mrb[6].mxu1 %vm150_vm0, %v4248_v27  ;;  %v943_v27 = vld [vmem:[%s3222_s12 + $0x18] sm:$0xff] }
 0x2b1   :  { %3786 = vmatpush3.bf16.msra.mxu1 %v3783_v61  ;;  %3559 = vmatprep.mubr.msk.f32.mxu1 %vm150_vm0, %v542_v62  ;;  %v3807_v33 = vpack.c.bf16 %v943_v27, %v942_v26  ;;  %v3292_v27 = vld [vmem:[%s3225_s9] ss:$0 sm:$0xff] }
 0x2b4   :  { %3560 = vmatmul.mubr.msk.f32.vlgmr.msra.gmra.mrb[8].mxu1 %vm150_vm0, %v4283_v63 }
 0x2b5   :  { %3562 = vmatprep.mubr.msk.f32.mxu1 %vm150_vm0, %v4285_v0 }
 0x2b8   :  { %3563 = vmatmul.mubr.msk.f32.gmra.mrb[10].mxu1 %vm150_vm0, %v4291_v1 }
 0x2b9   :  { %3587 = vmatprep.mubr.msk.f32.mxu1 %vm150_vm0, %v542_v62 }
 0x37f   :  { %v3533_v15 = vpop.f32.mrb[4].mxu1 }
 0x380   :  { %v523_v16 = vpop.f32.mrb[5].mxu1 }
 0x381   :  { %v4305_v17 = vpack.c.bf16 %v3533_v15, %v523_v16 }
 0x383   :  { %v3536_v18 = vpop.f32.mrb[6].mxu1 }
 0x384   :  { %v533_v19 = vpop.f32.mrb[7].mxu1 }
 0x385   :  { %v4307_v20 = vpack.c.bf16 %v3536_v18, %v533_v19 }
 0x387   :  { %v3561_v22 = vpop.f32.mrb[8].mxu1 }
 0x388   :  { %v726_v23 = vadd.f32 %v3561_v22, %v3265_v21  ;;  %v720_v24 = vpop.f32.mrb[9].mxu1  ;;  %v1331_v22 = vld [vmem:[%s1_s5 + $0x8] sm:$0xff] }
 0x389   :  { %v721_v25 = vadd.f32 %v3265_v21, %v720_v24 }
 0x38a   :  { %v740_v30 = vmax.f32 %v726_v23, 0.0 }
 0x38b   :  { %v739_v28 = vmax.f32 %v721_v25, 0.0  ;;  %v3564_v29 = vpop.f32.mrb[10].mxu1 }
 0x38c   :  { %v736_v31 = vadd.f32 %v3564_v29, %v3265_v21  ;;  %v730_v32 = vpop.f32.mrb[11].mxu1 }
 0x38d   :  { %v731_v34 = vadd.f32 %v3265_v21, %v730_v32  ;;  %3573 = vmatprep.mubr.msk.f32.mxu0 %vm150_vm0, %v739_v28  ;;  %v1330_v21 = vld [vmem:[%s1_s5] sm:$0xff]  ;;  %s4178_s5 = smov 32  }
 0x38e   :  { %3574 = vmatmul.mubr.msk.f32.vlgmr.msra.gmra.mrb[12].mxu0 %vm150_vm0, %v740_v30  ;;  %v742_v38 = vmax.f32 %v736_v31, 0.0 }
 0x38f   :  { %v741_v37 = vmax.f32 %v731_v34, 0.0  ;;  %3806 = vmatpush3.bf16.msra.mxu0 %v3803_v14 }
 0x390   :  { %3808 = vmatprep.subr.bf16.mxu0 %v3807_v33 }
 0x391   :  { %3576 = vmatprep.mubr.msk.f32.mxu0 %vm150_vm0, %v741_v37  ;;  %v1574_v37 = vld [vmem:[%s3227_s13 + $0x18] sm:$0xff] }
 0x392   :  { %3577 = vmatmul.mubr.msk.f32.gmra.mrb[14].mxu0 %vm150_vm0, %v742_v38  ;;  %v3859_v40 = vpack.c.bf16 %v1574_v37, %v1572_v36 }
 0x393   :  { %3810 = vmatpush3.bf16.msra.mxu0 %v3807_v33  ;;  %3601 = vmatprep.mubr.msk.f32.mxu0 %vm150_vm0, %v4204_v5 }
 0x394   :  { %3820 = vmatprep.subr.bf16.mxu0 %v3819_v39 }
 0x396   :  { %3602 = vmatmul.mubr.msk.f32.vlgmr.msra.gmra.mrb[16].mxu0 %vm150_vm0, %v4208_v7 }
 0x397   :  { %3822 = vmatpush3.bf16.msra.mxu0 %v3819_v39  ;;  %3604 = vmatprep.mubr.msk.f32.mxu0 %vm150_vm0, %v4210_v8 }
 0x398   :  { %3824 = vmatprep.subr.bf16.mxu0 %v3823_v42 }
 0x39a   :  { %3605 = vmatmul.mubr.msk.f32.gmra.mrb[18].mxu0 %vm150_vm0, %v4216_v9 }
 0x39b   :  { %3826 = vmatpush3.bf16.msra.mxu0 %v3823_v42  ;;  %v1573_v42 = vld [vmem:[%s3227_s13 + $0x10] sm:$0xff] }
 0x39c   :  { %3836 = vmatprep.subr.bf16.mxu0 %v4305_v17 }
 0x461   :  { %v3575_v43 = vpop.f32.mrb[12].mxu0 }
 0x462   :  { %v825_v44 = vpop.f32.mrb[13].mxu0 }
 0x463   :  { %v3795_v45 = vpack.c.bf16 %v3575_v43, %v825_v44  ;;  %v3861_v43 = vpack.c.bf16 %v1573_v42, %v1571_v41  ;;  %v1850_v44 = vld [vmem:[%s4382_s17 + $0x8] sm:$0xff] }
 0x465   :  { %v3578_v5 = vpop.f32.mrb[14].mxu0  ;;  %3796 = vmatprep.subr.bf16.mxu1 %v3795_v45 }
 0x466   :  { %v835_v46 = vpop.f32.mrb[15].mxu0  ;;  %3798 = vmatpush3.bf16.msra.mxu1 %v3795_v45  ;;  %v1852_v45 = vld [vmem:[%s4382_s17 + $0x18] sm:$0xff] }
 0x467   :  { %v3799_v47 = vpack.c.bf16 %v3578_v5, %v835_v46  ;;  %v1564_v5 = vld [vmem:[%s4387_s21 + $0x8] sm:$0xff]  ;;  %v1566_v46 = vld [vmem:[%s4387_s21 + $0x18] sm:$0xff] }
 0x469   :  { %3800 = vmatprep.subr.bf16.mxu1 %v3799_v47  ;;  %v3603_v7 = vpop.f32.mrb[16].mxu0 }
 0x46a   :  { %3802 = vmatpush3.bf16.msra.mxu1 %v3799_v47  ;;  %v1010_v8 = vpop.f32.mrb[17].mxu0  ;;  %v4393_v47 = vpack.c.bf16 %v1852_v45, %v1850_v44 }
 0x46b   :  { %v3811_v9 = vpack.c.bf16 %v3603_v7, %v1010_v8  ;;  %v1849_v7 = vld [vmem:[%s4382_s17] sm:$0xff]  ;;  %v3863_v8 = vpack.c.bf16 %v1566_v46, %v1564_v5 }
 0x46d   :  { %3588 = vmatmul.mubr.msk.f32.vlgmr.msra.gmra.mrb[12].mxu1 %vm150_vm0, %v4283_v63  ;;  %v3606_v48 = vpop.f32.mrb[18].mxu0  ;;  %3812 = vmatprep.subr.bf16.mxu1 %v3811_v9 }
 0x46e   :  { %v1020_v49 = vpop.f32.mrb[19].mxu0  ;;  %3814 = vmatpush3.bf16.msra.mxu1 %v3811_v9  ;;  %3590 = vmatprep.mubr.msk.f32.mxu1 %vm150_vm0, %v4285_v0  ;;  %v1851_v9 = vld [vmem:[%s4382_s17 + $0x10] sm:$0xff] }
 0x46f   :  { %v3815_v50 = vpack.c.bf16 %v3606_v48, %v1020_v49  ;;  %v4173_v48 = vmov 0.0   ;;  %v4399_v49 = vpack.c.bf16 %v1851_v9, %v1849_v7 }
 0x471   :  { %3591 = vmatmul.mubr.msk.f32.gmra.mrb[14].mxu1 %vm150_vm0, %v4291_v1  ;;  %3816 = vmatprep.subr.bf16.mxu1 %v3815_v50  ;;  %v3283_v1 = vld [vmem:[%s3223_s2] ss:$0 sm:$0xff] }
 0x472   :  { %3818 = vmatpush3.bf16.msra.mxu1 %v3815_v50  ;;  %3615 = vmatprep.mubr.msk.f32.mxu1 %vm150_vm0, %v936_v51  ;;  %v1854_v50 = vld [vmem:[%s4382_s17 + $0x28] sm:$0xff] }
 0x475   :  { %3616 = vmatmul.mubr.msk.f32.vlgmr.msra.gmra.mrb[16].mxu1 %vm150_vm0, %v4335_v52 }
 0x476   :  { %3618 = vmatprep.mubr.msk.f32.mxu1 %vm150_vm0, %v4337_v53 }
 0x479   :  { %3619 = vmatmul.mubr.msk.f32.gmra.mrb[18].mxu1 %vm150_vm0, %v939_v54 }
 0x47a   :  { %3643 = vmatprep.mubr.msk.f32.mxu1 %vm150_vm0, %v936_v51  ;;  %v1856_v51 = vld [vmem:[%s4382_s17 + $0x38] sm:$0xff] }
 0x540   :  { %v3589_v56 = vpop.f32.mrb[12].mxu1 }
 0x541   :  { %v923_v57 = vadd.f32 %v3589_v56, %v3274_v55  ;;  %v917_v58 = vpop.f32.mrb[13].mxu1 }
 0x542   :  { %v918_v59 = vadd.f32 %v3274_v55, %v917_v58  ;;  %v1860_v58 = vld [vmem:[%s4382_s17 + $0x58] sm:$0xff] }
 0x544   :  { %v3851_v60 = vpack.c.bf16 %v923_v57, %v918_v59  ;;  %v3592_v61 = vpop.f32.mrb[14].mxu1  ;;  %v1858_v57 = vld [vmem:[%s4382_s17 + $0x48] sm:$0xff] }
 0x545   :  { %v933_v62 = vadd.f32 %v3592_v61, %v3274_v55  ;;  %v927_v63 = vpop.f32.mrb[15].mxu1  ;;  %v1857_v61 = vld [vmem:[%s4382_s17 + $0x40] sm:$0xff] }
 0x546   :  { %v928_v0 = vadd.f32 %v3274_v55, %v927_v63 }
 0x548   :  { %v3855_v2 = vpack.c.bf16 %v933_v62, %v928_v0  ;;  %v3617_v3 = vpop.f32.mrb[16].mxu1  ;;  %v1859_v62 = vld [vmem:[%s4382_s17 + $0x50] sm:$0xff]  ;;  %v1862_v0 = vld [vmem:[%s4382_s17 + $0x68] sm:$0xff] }
 0x549   :  { %v1120_v4 = vadd.f32 %v3617_v3, %v3283_v1  ;;  %v1114_v6 = vpop.f32.mrb[17].mxu1  ;;  %v4421_v63 = vpack.c.bf16 %v1859_v62, %v1857_v61  ;;  %v1861_v3 = vld [vmem:[%s4382_s17 + $0x60] sm:$0xff] }
 0x54a   :  { %v1115_v10 = vadd.f32 %v3283_v1, %v1114_v6 }
 0x54b   :  { %v1134_v13 = vmax.f32 %v1120_v4, 0.0  ;;  %v1863_v4 = vld [vmem:[%s4382_s17 + $0x70] sm:$0xff] }
 0x54c   :  { %v1133_v11 = vmax.f32 %v1115_v10, 0.0  ;;  %v3620_v12 = vpop.f32.mrb[18].mxu1  ;;  %v4432_v6 = vpack.c.bf16 %v1863_v4, %v1861_v3 }
 0x54d   :  { %v1130_v14 = vadd.f32 %v3620_v12, %v3283_v1  ;;  %v1124_v15 = vpop.f32.mrb[19].mxu1  ;;  %v1563_v12 = vld [vmem:[%s4387_s21] sm:$0xff] }
 0x54e   :  { %v1125_v16 = vadd.f32 %v3283_v1, %v1124_v15  ;;  %3629 = vmatprep.mubr.msk.f32.mxu0 %vm150_vm0, %v1133_v11  ;;  %v1864_v1 = vld [vmem:[%s4382_s17 + $0x78] sm:$0xff] }
 0x54f   :  { %3630 = vmatmul.mubr.msk.f32.vlgmr.msra.gmra.mrb[20].mxu0 %vm150_vm0, %v1134_v13  ;;  %v1136_v19 = vmax.f32 %v1130_v14, 0.0  ;;  %v1565_v13 = vld [vmem:[%s4387_s21 + $0x10] sm:$0xff]  ;;  %v1568_v14 = vld [vmem:[%s4387_s21 + $0x28] sm:$0xff]  ;;  %v1570_v15 = vld [vmem:[%s4387_s21 + $0x38] sm:$0xff] }
 0x550   :  { %v1135_v18 = vmax.f32 %v1125_v16, 0.0  ;;  %3838 = vmatpush3.bf16.msra.mxu0 %v4305_v17  ;;  %v3865_v16 = vpack.c.bf16 %v1565_v13, %v1563_v12 }
 0x551   :  { %3840 = vmatprep.subr.bf16.mxu0 %v4307_v20 }
 0x552   :  { %3632 = vmatprep.mubr.msk.f32.mxu0 %vm150_vm0, %v1135_v18 }
 0x553   :  { %3633 = vmatmul.mubr.msk.f32.gmra.mrb[22].mxu0 %vm150_vm0, %v1136_v19  ;;  %v3867_v19 = vpack.c.bf16 %v1570_v15, %v1568_v14 }
 0x554   :  { %3842 = vmatpush3.bf16.msra.mxu0 %v4307_v20  ;;  %3657 = vmatprep.mubr.msk.f32.mxu0 %vm150_vm0, %v1330_v21 }
 0x555   :  { %3852 = vmatprep.subr.bf16.mxu0 %v3851_v60 }
 0x557   :  { %3658 = vmatmul.mubr.msk.f32.vlgmr.msra.gmra.mrb[24].mxu0 %vm150_vm0, %v1331_v22 }
 0x558   :  { %3854 = vmatpush3.bf16.msra.mxu0 %v3851_v60  ;;  %3679 = vmatprep.mubr.msk.f32.mxu0 %vm150_vm0, %v1330_v21  ;;  %v4417_v60 = vpack.c.bf16 %v1860_v58, %v1858_v57 }
 0x559   :  { %3856 = vmatprep.subr.bf16.mxu0 %v3855_v2 }
 0x55c   :  { %3858 = vmatpush3.bf16.msra.mxu0 %v3855_v2  ;;  %v4427_v2 = vpack.c.bf16 %v1864_v1, %v1862_v0 }
 0x55d   :  { %3876 = vmatprep.subr.bf16.mxu0 %v4393_v47 }
 0x55f   :  { %3680 = vmatmul.mubr.msk.f32.vlgmr.msra.gmra.mrb[26].mxu0 %vm150_vm0, %v1331_v22 }
 0x560   :  { %1945 = vmatprep.mubr.f32.mxu0 %v4173_v48  ;;  %3878 = vmatpush1.bf16.msra.mxu0 %v4399_v49 }
 0x622   :  { %v3631_v17 = vpop.f32.mrb[20].mxu0 }
 0x623   :  { %v1219_v23 = vpop.f32.mrb[21].mxu0 }
 0x624   :  { %v3827_v24 = vpack.c.bf16 %v3631_v17, %v1219_v23  ;;  %v1743_v23 = vld [vmem:[%s3228_s25 + $0x8] sm:$0xff] }
 0x626   :  { %v3634_v25 = vpop.f32.mrb[22].mxu0  ;;  %3828 = vmatprep.subr.bf16.mxu1 %v3827_v24 }
 0x627   :  { %v1229_v26 = vpop.f32.mrb[23].mxu0  ;;  %3830 = vmatpush3.bf16.msra.mxu1 %v3827_v24  ;;  %v1745_v24 = vld [vmem:[%s3228_s25 + $0x18] sm:$0xff] }
 0x628   :  { %v3831_v20 = vpack.c.bf16 %v3634_v25, %v1229_v26  ;;  %v3871_v26 = vpack.c.bf16 %v1745_v24, %v1743_v23 }
 0x62a   :  { %3832 = vmatprep.subr.bf16.mxu1 %v3831_v20  ;;  %v4412_v56 = vpop.f32.mrb[24].mxu0 }
 0x62b   :  { %3834 = vmatpush3.bf16.msra.mxu1 %v3831_v20  ;;  %v1404_v59 = vpop.f32.mrb[25].mxu0  ;;  %v1742_v20 = vld [vmem:[%s3228_s25] sm:$0xff] }
 0x62e   :  { %3644 = vmatmul.mubr.msk.f32.vlgmr.msra.gmra.mrb[20].mxu1 %vm150_vm0, %v4335_v52  ;;  %v4405_v52 = vpack.c.bf16 %v1856_v51, %v1854_v50 }
 0x62f   :  { %3646 = vmatprep.mubr.msk.f32.mxu1 %vm150_vm0, %v4337_v53  ;;  %v1853_v53 = vld [vmem:[%s4382_s17 + $0x20] sm:$0xff] }
 0x630   :  { %3880 = vmatprep.subr.bf16.mxu0 %v4405_v52 }
 0x632   :  { %3647 = vmatmul.mubr.msk.f32.gmra.mrb[22].mxu1 %vm150_vm0, %v939_v54  ;;  %v1855_v54 = vld [vmem:[%s4382_s17 + $0x30] sm:$0xff]  ;;  %v3681_v10 = vpop.f32.mrb[26].mxu0 }
 0x633   :  { %3668 = vmatprep.mubr.msk.f32.mxu1 %vm150_vm0, %v1330_v21  ;;  %v4410_v55 = vpack.c.bf16 %v1855_v54, %v1853_v53  ;;  %v1554_v11 = vpop.f32.mrb[27].mxu0  ;;  %v1567_v21 = vld [vmem:[%s4387_s21 + $0x20] sm:$0xff] }
 0x635   :  { %3882 = vmatpush1.bf16.msra.mxu0 %v4410_v55 }
 0x636   :  { %3884 = vmatprep.subr.bf16.mxu0 %v4417_v60 }
 0x639   :  { %3886 = vmatpush1.bf16.msra.mxu0 %v4421_v63 }
 0x63a   :  { %3888 = vmatprep.subr.bf16.mxu0 %v4427_v2 }
 0x63d   :  { %3890 = vmatpush1.bf16.msra.mxu0 %v4432_v6 }
 0x63e   :  { %3908 = vmatprep.subr.bf16.mxu0 %v4393_v47 }
 0x640   :  { %1946 = vmatmul.mubr.f32.vlgmr.msra.gmra.mrb[28].mxu0 %v4173_v48 }
 0x641   :  { %3910 = vmatpush1.bf16.msra.mxu0 %v4399_v49  ;;  %2142 = vmatprep.mubr.f32.mxu0 %v4173_v48 }
 0x642   :  { %3912 = vmatprep.subr.bf16.mxu0 %v4405_v52 }
 0x645   :  { %3914 = vmatpush1.bf16.msra.mxu0 %v4410_v55 }
 0x646   :  { %3916 = vmatprep.subr.bf16.mxu0 %v4417_v60 }
 0x649   :  { %3918 = vmatpush1.bf16.msra.mxu0 %v4421_v63 }
 0x64a   :  { %3920 = vmatprep.subr.bf16.mxu0 %v4427_v2 }
 0x64d   :  { %3922 = vmatpush1.bf16.msra.mxu0 %v4432_v6 }
 0x64e   :  { %3940 = vmatprep.subr.bf16.mxu0 %v4393_v47 }
 0x701   :  { %v3645_v28 = vpop.f32.mrb[20].mxu1 }
 0x702   :  { %v1317_v29 = vadd.f32 %v3645_v28, %v3292_v27  ;;  %v1311_v30 = vpop.f32.mrb[21].mxu1 }
 0x703   :  { %v1312_v31 = vadd.f32 %v3292_v27, %v1311_v30 }
 0x705   :  { %v3843_v32 = vpack.c.bf16 %v1317_v29, %v1312_v31  ;;  %v3648_v33 = vpop.f32.mrb[22].mxu1  ;;  %v1835_v31 = vlaneseq }
 0x706   :  { %v1327_v34 = vadd.f32 %v3648_v33, %v3292_v27  ;;  %v1321_v35 = vpop.f32.mrb[23].mxu1 }
 0x707   :  { %v1322_v38 = vadd.f32 %v3292_v27, %v1321_v35  ;;  %3844 = vmatprep.subr.bf16.mxu1 %v3843_v32  ;;  %v1744_v27 = vld [vmem:[%s3228_s25 + $0x10] sm:$0xff]  ;;  %v1833_v35 = vld [vmem:[%s3230_s3] sm:$0x3] }
 0x708   :  { %3846 = vmatpush3.bf16.msra.mxu1 %v3843_v32  ;;  %v3873_v28 = vpack.c.bf16 %v1744_v27, %v1742_v20  ;;  %v1836_v32 = vshrl.u32 %v1835_v31, 7 }
 0x709   :  { %v3847_v39 = vpack.c.bf16 %v1327_v34, %v1322_v38  ;;  %v1865_v34 = vld [vmem:[%s3231_s29] sm:$0x3]  ;;  %s4186_s29 = smov 48  }
 0x70a   :  { %v1837_v33 = vsub.s32 0, %v1836_v32 }
 0x70b   :  { %3848 = vmatprep.subr.bf16.mxu1 %v3847_v39 }
 0x70c   :  { %3850 = vmatpush3.bf16.msra.mxu1 %v3847_v39  ;;  %v4483_v36 = vrot.slane %v1865_v34, %v1837_v33  ;;  %v1838_v37 = vrot.slane %v1833_v35, %v1837_v33 }
 0x70d   :  { %3860 = vmatprep.subr.bf16.mxu1 %v3859_v40  ;;  %v1841_v40 = vsub.s32 1, %v1836_v32 }
 0x70f   :  { %3669 = vmatmul.mubr.msk.f32.vlgmr.msra.gmra.mrb[24].mxu1 %vm150_vm0, %v1331_v22  ;;  %v1569_v22 = vld [vmem:[%s4387_s21 + $0x30] sm:$0xff]  ;;  %v1842_v44 = vrot.slane %v1833_v35, %v1841_v40  ;;  %v4493_v51 = vrot.slane %v1865_v34, %v1841_v40 }
 0x710   :  { %3862 = vmatpush1.bf16.msra.mxu1 %v3861_v43  ;;  %1646 = vmatprep.mubr.f32.mxu1 %v4173_v48  ;;  %v3869_v25 = vpack.c.bf16 %v1569_v22, %v1567_v21 }
 0x711   :  { %3864 = vmatprep.subr.bf16.mxu1 %v3863_v8 }
 0x713   :  { %v1947_v29 = vpop.f32.mrb[28].mxu0 }
 0x714   :  { %v1949_v30 = vpop.f32.mrb[29].mxu0  ;;  %v1948_v38 = vadd.f32 %v1947_v29, %v4483_v36 }
 0x715   :  { %v1950_v53 = vadd.f32 %v1949_v30, %v4493_v51 }
 0x7e2   :  { %v3670_v18 = vpop.f32.mrb[24].mxu1 }
 0x7e3   :  { %v1479_v17 = vpop.f32.mrb[25].mxu1 }
 0x7e4   :  { %3303 = vmatmul.mubr.msk.f32.vlgmr.msra.gmra.mrb[26].mxu1 %vm1575_vm1, %v1479_v17 }
 0x7e5   :  { %3866 = vmatpush1.bf16.msra.mxu1 %v3865_v16  ;;  %1652 = vmatprep.mubr.f32.mxu1 %v4173_v48 }
 0x7e6   :  { %3868 = vmatprep.subr.bf16.mxu1 %v3867_v19 }
 0x7e8   :  { %3304 = vmatmul.mubr.msk.f32.gmra.mrb[28].mxu1 %vm1575_vm1, %v3670_v18 }
 0x7e9   :  { %3870 = vmatpush1.bf16.msra.mxu1 %v3869_v25  ;;  %1729 = vmatprep.mubr.f32.mxu1 %v4173_v48 }
 0x7ea   :  { %3872 = vmatprep.subr.bf16.mxu1 %v3871_v26 }
 0x7ec   :  { %3305 = vmatmul.mubr.msk.f32.vlgmr.msra.gmra.mrb[26].mxu1 %vm150_vm0, %v1404_v59 }
 0x7ed   :  { %3874 = vmatpush1.bf16.msra.mxu1 %v3873_v28  ;;  %1735 = vmatprep.mubr.f32.mxu1 %v4173_v48 }
 0x7ee   :  { %3892 = vmatprep.subr.bf16.mxu1 %v4393_v47 }
 0x7f0   :  { %3306 = vmatmul.mubr.msk.f32.gmra.mrb[28].mxu1 %vm150_vm0, %v4412_v56 }
 0x7f1   :  { %1816 = vmatprep.mubr.f32.mxu1 %v4173_v48 }
 0x7f4   :  { %3307 = vmatmul.mubr.msk.f32.vlgmr.msra.gmra.mrb[26].mxu1 %vm1575_vm1, %v1554_v11 }
 0x7f5   :  { %1822 = vmatprep.mubr.f32.mxu1 %v4173_v48  ;;  %3894 = vmatpush1.bf16.msra.mxu1 %v4399_v49 }
 0x7f6   :  { %3896 = vmatprep.subr.bf16.mxu1 %v4405_v52 }
 0x7f8   :  { %3308 = vmatmul.mubr.msk.f32.gmra.mrb[28].mxu1 %vm1575_vm1, %v3681_v10 }
 0x7f9   :  { %3898 = vmatpush1.bf16.msra.mxu1 %v4410_v55  ;;  %2039 = vmatprep.mubr.f32.mxu1 %v4173_v48 }
 0x7fa   :  { %3900 = vmatprep.subr.bf16.mxu1 %v4417_v60 }
 0x7fd   :  { %3902 = vmatpush1.bf16.msra.mxu1 %v4421_v63 }
 0x7fe   :  { %3904 = vmatprep.subr.bf16.mxu1 %v4427_v2 }
 0x801   :  { %3906 = vmatpush1.bf16.msra.mxu1 %v4432_v6 }
 0x802   :  { %3924 = vmatprep.subr.bf16.mxu1 %v4393_v47 }
 0x8c7   :  { %v1818_v39 = vpop.f32.mrb[26].mxu1 }
 0x8c8   :  { %v4486_v41 = vadd.f32 %v1838_v37, %v1818_v39  ;;  %v1820_v42 = vpop.f32.mrb[27].mxu1 }
 0x8c9   :  { %v4496_v56 = vadd.f32 %v1842_v44, %v1820_v42 }
 0x8ca   :  { %v1952_v43 = vadd.f32 %v1948_v38, %v4486_v41 }
 0x8cb   :  { %v1824_v45 = vpop.f32.mrb[28].mxu1 }
 0x8cc   :  { %v3309_v5 = vmul.f32 -1.442695, %v1952_v43  ;;  %v4489_v46 = vadd.f32 %v1838_v37, %v1824_v45  ;;  %v1826_v7 = vpop.f32.mrb[29].mxu1 }
 0x8cd   :  { %v4491_v8 = vadd.f32 %v1842_v44, %v1826_v7 }
 0x8ce   :  { %4098 = vpow2.f32 %v3309_v5 }
 0x8d8   :  { %v4099_v9 = vpop.eup %4098 }
 0x8d9   :  { %v1956_v50 = vadd.f32 1.0, %v4099_v9 }
 0x8db   :  { %4100 = vrcp.f32 %v1956_v50 }
 0x8e5   :  { %v4101_v54 = vpop.eup %4100 }
 0x8e6   :  { %v1959_v57 = vmul.f32 %v4101_v54, %v1950_v53  ;;  %v1962_v61 = vsub.f32 1.0, %v4101_v54  ;;  %v1968_v0 = vmul.f32 0.0, %v4101_v54 }
 0x8e8   :  { %v1960_v58 = vadd.f32 %v1959_v57, %v4496_v56 }
 0x8ea   :  { %4102 = vtanh.f32 %v1960_v58 }
 0x8f4   :  { %v4103_v59 = vpop.eup %4102 }
 0x8f5   :  { %1964 = vrot.lane.b32.xlu0 %v4103_v59, %s4177_s4 }
 0x967   :  { %v1965_v62 = vpop.permute.xlu0 %1964 }
 0x968   :  { %v1967_v1 = vmul.f32 %v1965_v62, %v1962_v61 }
 0x96a   :  { %v4500_v3 = vadd.f32 %v1968_v0, %v1967_v1 }
 0x96c   :  { %1971 = vrot.lane.b32.xlu0 %v4500_v3, %s4177_s4  ;;  %v2068_v26 = vrot.slane %v4500_v3, 6 }
 0x9de   :  { %v4504_v4 = vpop.permute.xlu0 %1971 }
 0x9df   :  { %3310 = vmatmul.mubr.msk.f32.vlgmr.msra.gmra.mrb[30].mxu1 %vm1877_vm2, %v4504_v4 }
 0x9e0   :  { %3926 = vmatpush1.bf16.msra.mxu1 %v4399_v49  ;;  %2245 = vmatprep.mubr.f32.mxu1 %v4173_v48 }
 0x9e1   :  { %3928 = vmatprep.subr.bf16.mxu1 %v4405_v52 }
 0x9e4   :  { %3930 = vmatpush1.bf16.msra.mxu1 %v4410_v55 }
 0x9e5   :  { %3932 = vmatprep.subr.bf16.mxu1 %v4417_v60 }
 0x9e8   :  { %3934 = vmatpush1.bf16.msra.mxu1 %v4421_v63 }
 0x9e9   :  { %3936 = vmatprep.subr.bf16.mxu1 %v4427_v2 }
 0x9ec   :  { %3938 = vmatpush1.bf16.msra.mxu1 %v4432_v6 }
 0x9ed   :  { %3956 = vmatprep.subr.bf16.mxu1 %v4393_v47 }
 0xab2   :  { %v2041_v10 = vpop.f32.mrb[30].mxu1 }
 0xab3   :  { %v2042_v11 = vadd.f32 %v2041_v10, %v4483_v36  ;;  %v2043_v12 = vpop.f32.mrb[31].mxu1 }
 0xab4   :  { %v2044_v19 = vadd.f32 %v2043_v12, %v4493_v51 }
 0xab5   :  { %v2047_v13 = vrot.slane %v2042_v11, 6 }
 0xab6   :  { %v2057_v21 = vrot.slane %v2044_v19, 6 }
 0xab7   :  { %v2049_v14 = vadd.f32 %v2047_v13, %v4486_v41 }
 0xab9   :  { %v3311_v15 = vmul.f32 -1.442695, %v2049_v14 }
 0xabb   :  { %4104 = vpow2.f32 %v3311_v15 }
 0xac5   :  { %v4105_v16 = vpop.eup %4104 }
 0xac6   :  { %v2053_v18 = vadd.f32 1.0, %v4105_v16 }
 0xac8   :  { %4106 = vrcp.f32 %v2053_v18 }
 0xad2   :  { %v4107_v22 = vpop.eup %4106 }
 0xad3   :  { %v2059_v17 = vmul.f32 %v4107_v22, %v2057_v21  ;;  %v2062_v25 = vsub.f32 1.0, %v4107_v22  ;;  %v2070_v27 = vmul.f32 %v4107_v22, %v2068_v26 }
 0xad5   :  { %v2060_v23 = vadd.f32 %v2059_v17, %v4496_v56 }
 0xad7   :  { %4108 = vtanh.f32 %v2060_v23 }
 0xae1   :  { %v4109_v24 = vpop.eup %4108 }
 0xae2   :  { %2064 = vrot.lane.b32.xlu1 %v4109_v24, %s4177_s4 }
 0xb54   :  { %v2065_v20 = vpop.permute.xlu1 %2064 }
 0xb55   :  { %v2067_v28 = vmul.f32 %v2065_v20, %v2062_v25 }
 0xb57   :  { %v4523_v29 = vadd.f32 %v2070_v27, %v2067_v28 }
 0xb59   :  { %v2073_v30 = vrot.slane %v4523_v29, 2  ;;  %v2171_v44 = vrot.slane %v4523_v29, 6  ;;  %v2683_v59 = vsel %vm2682_vm3, %v4500_v3, %v4523_v29 }
 0xb5b   :  { %2074 = vrot.lane.b32.xlu1 %v2073_v30, %s4177_s4 }
 0xbcd   :  { %v4529_v31 = vpop.permute.xlu1 %2074 }
 0xbce   :  { %3312 = vmatmul.mubr.msk.f32.vlgmr.msra.gmra.mrb[30].mxu0 %vm1877_vm2, %v4529_v31 }
 0xbcf   :  { %3942 = vmatpush1.bf16.msra.mxu0 %v4399_v49  ;;  %2348 = vmatprep.mubr.f32.mxu0 %v4173_v48 }
 0xbd0   :  { %3944 = vmatprep.subr.bf16.mxu0 %v4405_v52 }
 0xbd3   :  { %3946 = vmatpush1.bf16.msra.mxu0 %v4410_v55 }
 0xbd4   :  { %3948 = vmatprep.subr.bf16.mxu0 %v4417_v60 }
 0xbd7   :  { %3950 = vmatpush1.bf16.msra.mxu0 %v4421_v63 }
 0xbd8   :  { %3952 = vmatprep.subr.bf16.mxu0 %v4427_v2 }
 0xbdb   :  { %3954 = vmatpush1.bf16.msra.mxu0 %v4432_v6 }
 0xbdc   :  { %3972 = vmatprep.subr.bf16.mxu0 %v4393_v47 }
 0xca1   :  { %v2144_v32 = vpop.f32.mrb[30].mxu0 }
 0xca2   :  { %v2145_v33 = vadd.f32 %v2144_v32, %v4483_v36  ;;  %v2146_v34 = vpop.f32.mrb[31].mxu0 }
 0xca3   :  { %v2147_v42 = vadd.f32 %v2146_v34, %v4493_v51 }
 0xca4   :  { %v2150_v35 = vrot.slane %v2145_v33, 4 }
 0xca5   :  { %v2160_v43 = vrot.slane %v2147_v42, 4 }
 0xca6   :  { %v2152_v37 = vadd.f32 %v2150_v35, %v4486_v41 }
 0xca8   :  { %v3313_v38 = vmul.f32 -1.442695, %v2152_v37 }
 0xcaa   :  { %4110 = vpow2.f32 %v3313_v38 }
 0xcb4   :  { %v4111_v39 = vpop.eup %4110 }
 0xcb5   :  { %v2156_v40 = vadd.f32 1.0, %v4111_v39 }
 0xcb7   :  { %4112 = vrcp.f32 %v2156_v40 }
 0xcc1   :  { %v4113_v45 = vpop.eup %4112 }
 0xcc2   :  { %v2162_v5 = vmul.f32 %v4113_v45, %v2160_v43  ;;  %v2173_v7 = vmul.f32 %v4113_v45, %v2171_v44  ;;  %v2165_v53 = vsub.f32 1.0, %v4113_v45 }
 0xcc4   :  { %v2163_v9 = vadd.f32 %v2162_v5, %v4496_v56 }
 0xcc6   :  { %4114 = vtanh.f32 %v2163_v9 }
 0xcd0   :  { %v4115_v50 = vpop.eup %4114 }
 0xcd1   :  { %2167 = vrot.lane.b32.xlu0 %v4115_v50, %s4177_s4 }
 0xd43   :  { %v2168_v54 = vpop.permute.xlu0 %2167 }
 0xd44   :  { %v2170_v57 = vmul.f32 %v2168_v54, %v2165_v53 }
 0xd46   :  { %v2174_v58 = vadd.f32 %v2173_v7, %v2170_v57 }
 0xd48   :  { %v4551_v61 = vrot.slane %v2174_v58, 4  ;;  %v2685_v62 = vsel %vm2684_vm4, %v2683_v59, %v2174_v58  ;;  %v2274_v21 = vrot.slane %v2174_v58, 6 }
 0xd4a   :  { %2177 = vrot.lane.b32.xlu1 %v4551_v61, %s4177_s4 }
 0xdbc   :  { %v2178_v0 = vpop.permute.xlu1 %2177 }
 0xdbd   :  { %3314 = vmatmul.mubr.msk.f32.vlgmr.msra.gmra.mrb[32].mxu1 %vm1877_vm2, %v2178_v0 }
 0xdbe   :  { %3958 = vmatpush1.bf16.msra.mxu1 %v4399_v49  ;;  %2443 = vmatprep.mubr.f32.mxu1 %v4173_v48 }
 0xdbf   :  { %3960 = vmatprep.subr.bf16.mxu1 %v4405_v52 }
 0xdc2   :  { %3962 = vmatpush1.bf16.msra.mxu1 %v4410_v55 }
 0xdc3   :  { %3964 = vmatprep.subr.bf16.mxu1 %v4417_v60 }
 0xdc6   :  { %3966 = vmatpush1.bf16.msra.mxu1 %v4421_v63 }
 0xdc7   :  { %3968 = vmatprep.subr.bf16.mxu1 %v4427_v2 }
 0xdca   :  { %3970 = vmatpush1.bf16.msra.mxu1 %v4432_v6 }
 0xdcb   :  { %3988 = vmatprep.subr.bf16.mxu1 %v4393_v47 }
 0xe90   :  { %v2247_v1 = vpop.f32.mrb[32].mxu1 }
 0xe91   :  { %v2248_v10 = vadd.f32 %v2247_v1, %v4483_v36  ;;  %v2249_v11 = vpop.f32.mrb[33].mxu1 }
 0xe92   :  { %v2250_v18 = vadd.f32 %v2249_v11, %v4493_v51 }
 0xe93   :  { %v2253_v12 = vrot.slane %v2248_v10, 2 }
 0xe94   :  { %v2263_v19 = vrot.slane %v2250_v18, 2 }
 0xe95   :  { %v2255_v13 = vadd.f32 %v2253_v12, %v4486_v41 }
 0xe97   :  { %v3315_v14 = vmul.f32 -1.442695, %v2255_v13 }
 0xe99   :  { %4116 = vpow2.f32 %v3315_v14 }
 0xea3   :  { %v4117_v15 = vpop.eup %4116 }
 0xea4   :  { %v2259_v16 = vadd.f32 1.0, %v4117_v15 }
 0xea6   :  { %4118 = vrcp.f32 %v2259_v16 }
 0xeb0   :  { %v4119_v22 = vpop.eup %4118 }
 0xeb1   :  { %v2265_v17 = vmul.f32 %v4119_v22, %v2263_v19  ;;  %v2276_v23 = vmul.f32 %v4119_v22, %v2274_v21  ;;  %v2268_v25 = vsub.f32 1.0, %v4119_v22 }
 0xeb3   :  { %v2266_v47 = vadd.f32 %v2265_v17, %v4496_v56 }
 0xeb5   :  { %4120 = vtanh.f32 %v2266_v47 }
 0xebf   :  { %v4121_v24 = vpop.eup %4120 }
 0xec0   :  { %2270 = vrot.lane.b32.xlu0 %v4121_v24, %s4177_s4 }
 0xf32   :  { %v2271_v41 = vpop.permute.xlu0 %2270 }
 0xf33   :  { %v2273_v26 = vmul.f32 %v2271_v41, %v2268_v25 }
 0xf35   :  { %v2277_v20 = vadd.f32 %v2276_v23, %v2273_v26 }
 0xf37   :  { %v4571_v27 = vrot.slane %v2277_v20, 6  ;;  %v4574_v28 = vsel %vm2686_vm5, %v2685_v62, %v2277_v20 }
 0xf39   :  { %2280 = vrot.lane.b32.xlu1 %v4571_v27, %s4177_s4 }
 0xfab   :  { %v2281_v32 = vpop.permute.xlu1 %2280 }
 0xfac   :  { %3316 = vmatmul.mubr.msk.f32.vlgmr.msra.gmra.mrb[32].mxu0 %vm1877_vm2, %v2281_v32 }
 0xfad   :  { %3974 = vmatpush1.bf16.msra.mxu0 %v4399_v49  ;;  %2546 = vmatprep.mubr.f32.mxu0 %v4173_v48 }
 0xfae   :  { %3976 = vmatprep.subr.bf16.mxu0 %v4405_v52 }
 0xfb1   :  { %3978 = vmatpush1.bf16.msra.mxu0 %v4410_v55 }
 0xfb2   :  { %3980 = vmatprep.subr.bf16.mxu0 %v4417_v60 }
 0xfb5   :  { %3982 = vmatpush1.bf16.msra.mxu0 %v4421_v63 }
 0xfb6   :  { %3984 = vmatprep.subr.bf16.mxu0 %v4427_v2 }
 0xfb9   :  { %3986 = vmatpush1.bf16.msra.mxu0 %v4432_v6 }
0x107f   :  { %v2350_v56 = vpop.f32.mrb[32].mxu0 }
0x1080   :  { %v2351_v33 = vadd.f32 %v2350_v56, %v4483_v36  ;;  %v2352_v34 = vpop.f32.mrb[33].mxu0 }
0x1081   :  { %v2353_v40 = vadd.f32 %v2352_v34, %v4493_v51 }
0x1082   :  { %v2355_v35 = vadd.f32 %v2351_v33, %v4489_v46 }
0x1084   :  { %v3317_v37 = vmul.f32 -1.442695, %v2355_v35 }
0x1086   :  { %4122 = vpow2.f32 %v3317_v37 }
0x1090   :  { %v4123_v38 = vpop.eup %4122 }
0x1091   :  { %v2359_v39 = vadd.f32 1.0, %v4123_v38 }
0x1093   :  { %4124 = vrcp.f32 %v2359_v39 }
0x109d   :  { %v4125_v42 = vpop.eup %4124 }
0x109e   :  { %v2362_v43 = vmul.f32 %v4125_v42, %v2353_v40  ;;  %v2365_v5 = vsub.f32 1.0, %v4125_v42  ;;  %v2372_v9 = vmul.f32 %v4125_v42, %v4571_v27 }
0x10a0   :  { %v2363_v44 = vadd.f32 %v2362_v43, %v4491_v8 }
0x10a2   :  { %4126 = vtanh.f32 %v2363_v44 }
0x10ac   :  { %v4127_v45 = vpop.eup %4126 }
0x10ad   :  { %2367 = vrot.lane.b32.xlu0 %v4127_v45, %s4177_s4 }
0x111f   :  { %v2368_v7 = vpop.permute.xlu0 %2367 }
0x1120   :  { %v2370_v50 = vmul.f32 %v2368_v7, %v2365_v5 }
0x1122   :  { %v4593_v53 = vadd.f32 %v2372_v9, %v2370_v50 }
0x1124   :  { %2375 = vrot.lane.b32.xlu1 %v4593_v53, %s4177_s4  ;;  %v2472_v11 = vrot.slane %v4593_v53, 6 }
0x1196   :  { %v4597_v54 = vpop.permute.xlu1 %2375 }
0x1197   :  { %3318 = vmatmul.mubr.msk.f32.vlgmr.msra.gmra.mrb[34].mxu1 %vm1877_vm2, %v4597_v54 }
0x1198   :  { %3990 = vmatpush1.bf16.msra.mxu1 %v4399_v49  ;;  %2649 = vmatprep.mubr.f32.mxu1 %v4173_v48 }
0x1199   :  { %3992 = vmatprep.subr.bf16.mxu1 %v4405_v52 }
0x119c   :  { %3994 = vmatpush1.bf16.msra.mxu1 %v4410_v55 }
0x119d   :  { %3996 = vmatprep.subr.bf16.mxu1 %v4417_v60 }
0x11a0   :  { %3998 = vmatpush1.bf16.msra.mxu1 %v4421_v63 }
0x11a1   :  { %4000 = vmatprep.subr.bf16.mxu1 %v4427_v2 }
0x11a4   :  { %4002 = vmatpush1.bf16.msra.mxu1 %v4432_v6 }
0x126a   :  { %v2445_v57 = vpop.f32.mrb[34].mxu1 }
0x126b   :  { %v2446_v58 = vadd.f32 %v2445_v57, %v4483_v36  ;;  %v2447_v59 = vpop.f32.mrb[35].mxu1 }
0x126c   :  { %v2448_v55 = vadd.f32 %v2447_v59, %v4493_v51 }
0x126d   :  { %v2451_v62 = vrot.slane %v2446_v58, 6 }
0x126e   :  { %v2461_v60 = vrot.slane %v2448_v55, 6 }
0x126f   :  { %v2453_v49 = vadd.f32 %v2451_v62, %v4489_v46 }
0x1271   :  { %v3319_v48 = vmul.f32 -1.442695, %v2453_v49 }
0x1273   :  { %4128 = vpow2.f32 %v3319_v48 }
0x127d   :  { %v4129_v52 = vpop.eup %4128 }
0x127e   :  { %v2457_v0 = vadd.f32 1.0, %v4129_v52 }
0x1280   :  { %4130 = vrcp.f32 %v2457_v0 }
0x128a   :  { %v4131_v63 = vpop.eup %4130 }
0x128b   :  { %v2463_v1 = vmul.f32 %v4131_v63, %v2461_v60  ;;  %v2466_v10 = vsub.f32 1.0, %v4131_v63  ;;  %v2474_v14 = vmul.f32 %v4131_v63, %v2472_v11 }
0x128d   :  { %v2464_v2 = vadd.f32 %v2463_v1, %v4491_v8  ;;  %v2791_v1 = vld [vmem:[%s3234_s14] sm:$0xff] }
0x128f   :  { %4132 = vtanh.f32 %v2464_v2 }
0x1299   :  { %v4133_v6 = vpop.eup %4132 }
0x129a   :  { %2468 = vrot.lane.b32.xlu0 %v4133_v6, %s4177_s4  ;;  %v2792_v6 = vld [vmem:[%s3234_s14 + $0x8] sm:$0xff] }
0x129b   :  { %v4019_v11 = vpack.c.bf16 %v2792_v6, %v2791_v1  ;;  %v2923_v1 = vld [vmem:[%s4675_s18 + $0x30] sm:$0xff] }
0x129d   :  { %4020 = vmatprep.subr.bf16.mxu1 %v4019_v11 }
0x130c   :  { %v2469_v12 = vpop.permute.xlu0 %2468 }
0x130d   :  { %v2471_v13 = vmul.f32 %v2469_v12, %v2466_v10  ;;  %v2694_v10 = vld [vmem:[%s3232_s10 + $0x18] sm:$0xff] }
0x130f   :  { %v4615_v15 = vadd.f32 %v2474_v14, %v2471_v13  ;;  %v2793_v13 = vld [vmem:[%s3234_s14 + $0x10] sm:$0xff]  ;;  %v2794_v14 = vld [vmem:[%s3234_s14 + $0x18] sm:$0xff] }
0x1311   :  { %v2477_v16 = vrot.slane %v4615_v15, 2  ;;  %v2575_v20 = vrot.slane %v4615_v15, 6  ;;  %v2688_v42 = vsel %vm2682_vm3, %v4593_v53, %v4615_v15 }
0x1313   :  { %2478 = vrot.lane.b32.xlu1 %v2477_v16, %s4177_s4 }
0x1385   :  { %v4621_v18 = vpop.permute.xlu1 %2478 }
0x1386   :  { %3320 = vmatmul.mubr.msk.f32.vlgmr.msra.gmra.mrb[34].mxu0 %vm1877_vm2, %v4621_v18 }
0x1459   :  { %v2548_v19 = vpop.f32.mrb[34].mxu0 }
0x145a   :  { %v2549_v21 = vadd.f32 %v2548_v19, %v4483_v36  ;;  %v2550_v22 = vpop.f32.mrb[35].mxu0  ;;  %v2695_v19 = vld [vmem:[%s3232_s10 + $0x20] sm:$0xff] }
0x145b   :  { %v2551_v41 = vadd.f32 %v2550_v22, %v4493_v51  ;;  %v2696_v22 = vld [vmem:[%s3232_s10 + $0x28] sm:$0xff] }
0x145c   :  { %v2554_v17 = vrot.slane %v2549_v21, 4  ;;  %v4023_v21 = vpack.c.bf16 %v2794_v14, %v2793_v13 }
0x145d   :  { %v2564_v26 = vrot.slane %v2551_v41, 4  ;;  %v2698_v41 = vld [vmem:[%s3232_s10 + $0x38] sm:$0xff] }
0x145e   :  { %v2556_v23 = vadd.f32 %v2554_v17, %v4489_v46  ;;  %v2795_v17 = vld [vmem:[%s3234_s14 + $0x20] sm:$0xff] }
0x1460   :  { %v3321_v47 = vmul.f32 -1.442695, %v2556_v23  ;;  %v2796_v23 = vld [vmem:[%s3234_s14 + $0x28] sm:$0xff] }
0x1462   :  { %4134 = vpow2.f32 %v3321_v47  ;;  %v4011_v47 = vpack.c.bf16 %v2696_v22, %v2695_v19 }
0x146c   :  { %v4135_v24 = vpop.eup %4134 }
0x146d   :  { %v2560_v25 = vadd.f32 1.0, %v4135_v24  ;;  %v4027_v24 = vpack.c.bf16 %v2796_v23, %v2795_v17 }
0x146f   :  { %4136 = vrcp.f32 %v2560_v25  ;;  %v2697_v25 = vld [vmem:[%s3232_s10 + $0x30] sm:$0xff] }
0x1479   :  { %v4137_v32 = vpop.eup %4136 }
0x147a   :  { %v2566_v56 = vmul.f32 %v4137_v32, %v2564_v26  ;;  %v2577_v33 = vmul.f32 %v4137_v32, %v2575_v20  ;;  %v2569_v37 = vsub.f32 1.0, %v4137_v32  ;;  %v2797_v26 = vld [vmem:[%s3234_s14 + $0x30] sm:$0xff]  ;;  %v2798_v20 = vld [vmem:[%s3234_s14 + $0x38] sm:$0xff]  ;;  %v4015_v32 = vpack.c.bf16 %v2698_v41, %v2697_v25  ;;  %s3237_s14 = sld [smem:[%s4803_s0 + %s4189_s11]]  }
0x147c   :  { %v2567_v34 = vadd.f32 %v2566_v56, %v4491_v8  ;;  %v4031_v56 = vpack.c.bf16 %v2798_v20, %v2797_v26 }
0x147e   :  { %4138 = vtanh.f32 %v2567_v34 }
0x1488   :  { %v4139_v35 = vpop.eup %4138 }
0x1489   :  { %2571 = vrot.lane.b32.xlu0 %v4139_v35, %s4177_s4 }
0x14fb   :  { %v2572_v38 = vpop.permute.xlu0 %2571 }
0x14fc   :  { %v2574_v39 = vmul.f32 %v2572_v38, %v2569_v37 }
0x14fe   :  { %v2578_v40 = vadd.f32 %v2577_v33, %v2574_v39 }
0x1500   :  { %v4634_v43 = vrot.slane %v2578_v40, 4  ;;  %v4637_v44 = vsel %vm2684_vm4, %v2688_v42, %v2578_v40  ;;  %v2678_v52 = vrot.slane %v2578_v40, 6  ;;  %v2917_v40 = vld [vmem:[%s4675_s18] sm:$0xff]  ;;  %v2918_v42 = vld [vmem:[%s4675_s18 + $0x8] sm:$0xff] }
0x1502   :  { %2581 = vrot.lane.b32.xlu1 %v4634_v43, %s4177_s4 }
0x1506   :  { %2708 = vrot.lane.b32.xlu1 %v4574_v28, %s4177_s4 }
0x150a   :  { %2893 = vrot.lane.b32.xlu1 %v4574_v28, %s4178_s5 }
0x1574   :  { %v2582_v45 = vpop.permute.xlu1 %2581 }
0x1575   :  { %3322 = vmatmul.mubr.msk.f32.vlgmr.msra.gmra.mrb[36].mxu1 %vm1877_vm2, %v2582_v45  ;;  %v4035_v45 = vpack.c.bf16 %v2918_v42, %v2917_v40 }
0x1576   :  { %4022 = vmatpush3.bf16.msra.mxu1 %v4019_v11  ;;  %v3324_v11 = vld [vmem:[%s3233_s26] ss:$0 sm:$0xff] }
0x1577   :  { %4024 = vmatprep.subr.bf16.mxu1 %v4023_v21 }
0x1578   :  { %v4646_v5 = vpop.permute.xlu1 %2708 }
0x1579   :  { %3698 = vmatprep.mubr.msk.f32.mxu0 %vm1877_vm2, %v4646_v5  ;;  %3717 = vmatprep.mubr.msk.f32.mxu1 %vm1877_vm2, %v4646_v5 }
0x157a   :  { %4026 = vmatpush3.bf16.msra.mxu1 %v4023_v21 }
0x157b   :  { %4028 = vmatprep.subr.bf16.mxu1 %v4027_v24 }
0x157e   :  { %4030 = vmatpush3.bf16.msra.mxu1 %v4027_v24 }
0x157f   :  { %4032 = vmatprep.subr.bf16.mxu1 %v4031_v56 }
0x1582   :  { %4034 = vmatpush3.bf16.msra.mxu1 %v4031_v56 }
0x1648   :  { %v2651_v7 = vpop.f32.mrb[36].mxu1 }
0x1649   :  { %v2652_v9 = vadd.f32 %v2651_v7, %v4483_v36  ;;  %v2653_v50 = vpop.f32.mrb[37].mxu1  ;;  %v2920_v7 = vld [vmem:[%s4675_s18 + $0x18] sm:$0xff] }
0x164a   :  { %v2654_v49 = vadd.f32 %v2653_v50, %v4493_v51  ;;  %v2692_v51 = vld [vmem:[%s3232_s10 + $0x8] sm:$0xff]  ;;  %v2921_v50 = vld [vmem:[%s4675_s18 + $0x20] sm:$0xff] }
0x164b   :  { %v2657_v57 = vrot.slane %v2652_v9, 2 }
0x164c   :  { %v2667_v48 = vrot.slane %v2654_v49, 2 }
0x164d   :  { %v2659_v58 = vadd.f32 %v2657_v57, %v4489_v46  ;;  %v2691_v46 = vld [vmem:[%s3232_s10] sm:$0xff]  ;;  %v2922_v57 = vld [vmem:[%s4675_s18 + $0x28] sm:$0xff] }
0x164e   :  { %v4003_v2 = vpack.c.bf16 %v2692_v51, %v2691_v46 }
0x164f   :  { %v3323_v59 = vmul.f32 -1.442695, %v2659_v58  ;;  %v4043_v58 = vpack.c.bf16 %v2922_v57, %v2921_v50 }
0x1650   :  { %4004 = vmatprep.subr.bf16.mxu0 %v4003_v2 }
0x1651   :  { %4140 = vpow2.f32 %v3323_v59  ;;  %4006 = vmatpush3.bf16.msra.mxu0 %v4003_v2  ;;  %v3327_v59 = vld [vmem:[%s3235_s22] ss:$0 sm:$0xff]  ;;  %v2924_v2 = vld [vmem:[%s4675_s18 + $0x38] sm:$0xff] }
0x1652   :  { %v4047_v6 = vpack.c.bf16 %v2924_v2, %v2923_v1 }
0x165b   :  { %v4141_v28 = vpop.eup %4140 }
0x165c   :  { %v2663_v62 = vadd.f32 1.0, %v4141_v28 }
0x165e   :  { %4142 = vrcp.f32 %v2663_v62 }
0x1668   :  { %v4143_v0 = vpop.eup %4142 }
0x1669   :  { %v2669_v55 = vmul.f32 %v4143_v0, %v2667_v48  ;;  %v2680_v60 = vmul.f32 %v4143_v0, %v2678_v52  ;;  %v2672_v33 = vsub.f32 1.0, %v4143_v0 }
0x166b   :  { %v2670_v63 = vadd.f32 %v2669_v55, %v4491_v8  ;;  %v2693_v8 = vld [vmem:[%s3232_s10 + $0x10] sm:$0xff]  ;;  %s3241_s10 = sld [smem:[%s4803_s0 + %s4178_s5]]  }
0x166c   :  { %v4007_v12 = vpack.c.bf16 %v2694_v10, %v2693_v8 }
0x166d   :  { %4144 = vtanh.f32 %v2670_v63 }
0x166e   :  { %4008 = vmatprep.subr.bf16.mxu0 %v4007_v12 }
0x166f   :  { %4010 = vmatpush3.bf16.msra.mxu0 %v4007_v12 }
0x1670   :  { %4012 = vmatprep.subr.bf16.mxu0 %v4011_v47 }
0x1673   :  { %4014 = vmatpush3.bf16.msra.mxu0 %v4011_v47 }
0x1674   :  { %4016 = vmatprep.subr.bf16.mxu0 %v4015_v32 }
0x1677   :  { %v4145_v36 = vpop.eup %4144  ;;  %4018 = vmatpush3.bf16.msra.mxu0 %v4015_v32 }
0x1678   :  { %2674 = vrot.lane.b32.xlu0 %v4145_v36, %s4177_s4  ;;  %4036 = vmatprep.subr.bf16.mxu0 %v4035_v45 }
0x16ea   :  { %v2675_v34 = vpop.permute.xlu0 %2674 }
0x16eb   :  { %v2677_v35 = vmul.f32 %v2675_v34, %v2672_v33 }
0x16ed   :  { %v4663_v37 = vadd.f32 %v2680_v60, %v2677_v35 }
0x16ef   :  { %v2690_v38 = vsel %vm2686_vm5, %v4637_v44, %v4663_v37  ;;  %v2919_v44 = vld [vmem:[%s4675_s18 + $0x10] sm:$0xff] }
0x16f0   :  { %2710 = vrot.lane.b32.xlu0 %v2690_v38, %s4177_s4  ;;  %v4039_v9 = vpack.c.bf16 %v2920_v7, %v2919_v44 }
0x16f4   :  { %2895 = vrot.lane.b32.xlu0 %v2690_v38, %s4178_s5 }
0x1762   :  { %v2711_v39 = vpop.permute.xlu0 %2710 }
0x1763   :  { %3699 = vmatmul.mubr.msk.f32.vlgmr.msra.gmra.mrb[36].mxu0 %vm1877_vm2, %v2711_v39  ;;  %3718 = vmatmul.mubr.msk.f32.vlgmr.msra.gmra.mrb[38].mxu1 %vm1877_vm2, %v2711_v39 }
0x1764   :  { %4038 = vmatpush3.bf16.msra.mxu0 %v4035_v45 }
0x1765   :  { %4040 = vmatprep.subr.bf16.mxu0 %v4039_v9 }
0x1766   :  { %v2896_v15 = vpop.permute.xlu0 %2895 }
0x1768   :  { %4042 = vmatpush3.bf16.msra.mxu0 %v4039_v9 }
0x1769   :  { %4044 = vmatprep.subr.bf16.mxu0 %v4043_v58 }
0x176c   :  { %4046 = vmatpush3.bf16.msra.mxu0 %v4043_v58 }
0x176d   :  { %4048 = vmatprep.subr.bf16.mxu0 %v4047_v6 }
0x1770   :  { %4050 = vmatpush3.bf16.msra.mxu0 %v4047_v6 }
0x1836   :  { %v3700_v28 = vpop.f32.mrb[36].mxu0  ;;  %v3719_v62 = vpop.f32.mrb[38].mxu1 }
0x1837   :  { %v2878_v49 = vadd.f32 %v3719_v62, %v3327_v59  ;;  %v2782_v48 = vpop.f32.mrb[37].mxu0  ;;  %v2872_v52 = vpop.f32.mrb[39].mxu1  ;;  %v4714_v29 = vadd.f32 %v3700_v28, %v3324_v11 }
0x1838   :  { %v2873_v0 = vadd.f32 %v3327_v59, %v2872_v52  ;;  %v2783_v19 = vadd.f32 %v3324_v11, %v2782_v48 }
0x1839   :  { %v3331_v55 = vmul.f32 -1.442695, %v2878_v49 }
0x183a   :  { %v3330_v60 = vmul.f32 -1.442695, %v2873_v0  ;;  %v3084_v22 = vrot.slane %v2783_v19, 2  ;;  %v3088_v17 = vrot.slane %v2783_v19, 4 }
0x183b   :  { %4146 = vpow2.f32 %v3331_v55 }
0x183c   :  { %4148 = vpow2.f32 %v3330_v60 }
0x1845   :  { %v4147_v63 = vpop.eup %4146 }
0x1846   :  { %v4149_v36 = vpop.eup %4148  ;;  %v2888_v46 = vadd.f32 1.0, %v4147_v63 }
0x1847   :  { %v2887_v51 = vadd.f32 1.0, %v4149_v36 }
0x1848   :  { %4150 = vrcp.f32 %v2888_v46 }
0x1849   :  { %4152 = vrcp.f32 %v2887_v51 }
0x1852   :  { %v4151_v8 = vpop.eup %4150 }
0x1853   :  { %v4153_v10 = vpop.eup %4152  ;;  %v2902_v12 = vsub.f32 1.0, %v4151_v8  ;;  %v2900_v24 = vmul.f32 %v4151_v8, %v2896_v15 }
0x1854   :  { %v2901_v13 = vsub.f32 1.0, %v4153_v10 }
0x1855   :  { %v2906_v14 = vmul.f32 %v2902_v12, %v2711_v39 }
0x1856   :  { %v2905_v21 = vmul.f32 %v2901_v13, %v4646_v5  ;;  %v3092_v5 = vrot.slane %v2783_v19, 6 }
0x1857   :  { %2911 = vrot.lane.b32.xlu0 %v2906_v14, %s4178_s5 }
0x1858   :  { %2909 = vrot.lane.b32.xlu1 %v2905_v21, %s4178_s5 }
0x185b   :  { %3123 = vrot.lane.b32.xlu0 %v2783_v19, %s4184_s27 }
0x185c   :  { %3085 = vrot.lane.b32.xlu1 %v3084_v22, %s4169_s6 }
0x185f   :  { %3089 = vrot.lane.b32.xlu0 %v3088_v17, %s4178_s5 }
0x1860   :  { %3127 = vrot.lane.b32.xlu1 %v3088_v17, %s4169_s6 }
0x1863   :  { %3022 = vrot.lane.b32.xlu0 %v2477_v16, %s4185_s28  ;;  %v2894_v16 = vpop.permute.xlu1 %2893 }
0x1864   :  { %3014 = vrot.lane.b32.xlu1 %v2073_v30, %s4185_s28  ;;  %v3100_v30 = vrot.slane %v4714_v29, 2  ;;  %v2899_v47 = vmul.f32 %v4153_v10, %v2894_v16 }
0x1867   :  { %3057 = vrot.lane.b32.xlu0 %v4593_v53, %s4178_s5  ;;  %v3104_v53 = vrot.slane %v4714_v29, 4 }
0x1868   :  { %3050 = vrot.lane.b32.xlu1 %v4500_v3, %s4178_s5  ;;  %v3027_v3 = vrot.slane %v4663_v37, 6 }
0x186b   :  { %3130 = vrot.lane.b32.xlu0 %v3092_v5, %s4178_s5 }
0x186c   :  { %3093 = vrot.lane.b32.xlu1 %v3092_v5, %s4186_s29 }
0x186f   :  { %3054 = vrot.lane.b32.xlu0 %v4551_v61, %s4185_s28 }
0x1870   :  { %3061 = vrot.lane.b32.xlu1 %v4634_v43, %s4185_s28 }
0x1873   :  { %3097 = vrot.lane.b32.xlu0 %v4714_v29, %s4177_s4 }
0x1874   :  { %3133 = vrot.lane.b32.xlu1 %v4714_v29, %s4186_s29 }
0x1877   :  { %3028 = vrot.lane.b32.xlu0 %v3027_v3, %s4178_s5 }
0x1878   :  { %3018 = vrot.lane.b32.xlu1 %v4571_v27, %s4178_s5 }
0x187b   :  { %3136 = vrot.lane.b32.xlu0 %v3100_v30, %s4177_s4 }
0x187c   :  { %3101 = vrot.lane.b32.xlu1 %v3100_v30, %s4187_s30 }
0x187f   :  { %3105 = vrot.lane.b32.xlu0 %v3104_v53, %s4185_s28 }
0x1880   :  { %3139 = vrot.lane.b32.xlu1 %v3104_v53, %s4187_s30 }
0x18c9   :  { %v2912_v23 = vpop.permute.xlu0 %2911 }
0x18ca   :  { %v2910_v25 = vpop.permute.xlu1 %2909  ;;  %v2916_v26 = vsel %vm150_vm0, %v2900_v24, %v2912_v23 }
0x18cb   :  { %v2915_v41 = vsel %vm150_vm0, %v2899_v47, %v2910_v25 }
0x18cc   :  { %3736 = vmatprep.mubr.msk.f32.mxu0 %vm1877_vm2, %v2915_v41 }
0x18cd   :  { %v3124_v20 = vpop.permute.xlu0 %3123  ;;  %3737 = vmatmul.mubr.msk.f32.vlgmr.msra.gmra.mrb[38].mxu0 %vm1877_vm2, %v2916_v26 }
0x18ce   :  { %v3086_v32 = vpop.permute.xlu1 %3085  ;;  %v3145_v34 = vsel %vm1575_vm1, %v3124_v20, %v3084_v22 }
0x18cf   :  { %v3112_v56 = vsel %vm1575_vm1, %v2783_v19, %v3086_v32  ;;  %v3108_v19 = vrot.slane %v4714_v29, 6 }
0x18d1   :  { %v3090_v33 = vpop.permute.xlu0 %3089 }
0x18d2   :  { %v3113_v35 = vsel %vm150_vm0, %v3112_v56, %v3090_v33  ;;  %v3128_v37 = vpop.permute.xlu1 %3127 }
0x18d3   :  { %v3146_v38 = vsel %vm150_vm0, %v3145_v34, %v3128_v37 }
0x18d5   :  { %v3023_v39 = vpop.permute.xlu0 %3022 }
0x18d6   :  { %v3015_v40 = vpop.permute.xlu1 %3014  ;;  %v3035_v60 = vsel %vm150_vm0, %v4597_v54, %v3023_v39 }
0x18d7   :  { %v3036_v36 = vsel %vm1877_vm2, %v3035_v60, %v4634_v43 }
0x18d9   :  { %v3058_v42 = vpop.permute.xlu0 %3057 }
0x18da   :  { %v3051_v44 = vpop.permute.xlu1 %3050  ;;  %v3068_v59 = vsel %vm150_vm0, %v3058_v42, %v4621_v18 }
0x18db   :  { %v3065_v57 = vsel %vm150_vm0, %v3051_v44, %v4529_v31 }
0x18dd   :  { %v3131_v45 = vpop.permute.xlu0 %3130 }
0x18de   :  { %v3147_v7 = vsel %vm3114_vm6, %v3146_v38, %v3131_v45  ;;  %v3094_v9 = vpop.permute.xlu1 %3093 }
0x18df   :  { %v3115_v50 = vsel %vm3114_vm6, %v3113_v35, %v3094_v9 }
0x18e1   :  { %v3055_v58 = vpop.permute.xlu0 %3054 }
0x18e2   :  { %v3066_v28 = vsel %vm1877_vm2, %v3065_v57, %v3055_v58  ;;  %v3062_v62 = vpop.permute.xlu1 %3061 }
0x18e3   :  { %v3067_v49 = vsel %vm3033_vm7, %v3066_v28, %v4571_v27  ;;  %v3069_v48 = vsel %vm1877_vm2, %v3068_v59, %v3062_v62  ;;  %v3031_v27 = vsel %vm150_vm0, %v4504_v4, %v3015_v40  ;;  %v3332_v4 = vld [vmem:[%s3237_s14] ss:$0 sm:$0xff] }
0x18e4   :  { %v3070_v52 = vsel %vm3033_vm7, %v3069_v48, %v3027_v3  ;;  %v3032_v51 = vsel %vm1877_vm2, %v3031_v27, %v4551_v61 }
0x18e5   :  { %v3073_v0 = vcombine.low %v3067_v49, %v3070_v52  ;;  %v3098_v55 = vpop.permute.xlu0 %3097 }
0x18e6   :  { %v3116_v31 = vsel %vm1877_vm2, %v3115_v50, %v3098_v55  ;;  %v3134_v63 = vpop.permute.xlu1 %3133 }
0x18e7   :  { %3336 = vst.sshfl [vmem:[%s3242_s7] sm:$0x33 pattern:$0x76325410] %v3073_v0  ;;  %v3148_v18 = vsel %vm1877_vm2, %v3147_v7, %v3134_v63 }
0x18e9   :  { %v3029_v46 = vpop.permute.xlu0 %3028 }
0x18ea   :  { %v3037_v54 = vsel %vm3033_vm7, %v3036_v36, %v3029_v46  ;;  %v3019_v1 = vpop.permute.xlu1 %3018 }
0x18eb   :  { %v3034_v2 = vsel %vm3033_vm7, %v3032_v51, %v3019_v1 }
0x18ec   :  { %v3040_v6 = vcombine.low %v3034_v2, %v3037_v54 }
0x18ed   :  { %v3137_v17 = vpop.permute.xlu0 %3136 }
0x18ee   :  { %3335 = vst.sshfl [vmem:[%s3241_s10] sm:$0x33 pattern:$0x76325410] %v3040_v6  ;;  %v3102_v5 = vpop.permute.xlu1 %3101  ;;  %v3149_v41 = vsel %vm3117_vm8, %v3148_v18, %v3137_v17 }
0x18ef   :  { %v3118_v47 = vsel %vm3117_vm8, %v3116_v31, %v3102_v5 }
0x18f1   :  { %v3106_v3 = vpop.permute.xlu0 %3105 }
0x18f2   :  { %v3140_v30 = vpop.permute.xlu1 %3139  ;;  %v3119_v24 = vsel %vm3033_vm7, %v3118_v47, %v3106_v3 }
0x18f3   :  { %v3150_v32 = vsel %vm3033_vm7, %v3149_v41, %v3140_v30 }
0x19a0   :  { %v3738_v8 = vpop.f32.mrb[38].mxu0 }
0x19a1   :  { %v3010_v10 = vadd.f32 %v3738_v8, %v3332_v4  ;;  %v3004_v43 = vpop.f32.mrb[39].mxu0 }
0x19a2   :  { %v3005_v11 = vadd.f32 %v3332_v4, %v3004_v43 }
0x19a3   :  { %3167 = vrot.lane.b32.xlu0 %v3010_v10, %s4177_s4  ;;  %v3170_v12 = vrot.slane %v3010_v10, 2  ;;  %v3174_v14 = vrot.slane %v3010_v10, 4  ;;  %v3178_v22 = vrot.slane %v3010_v10, 6 }
0x19a4   :  { %v3158_v13 = vrot.slane %v3005_v11, 4  ;;  %v3154_v61 = vrot.slane %v3005_v11, 2  ;;  %v3162_v21 = vrot.slane %v3005_v11, 6 }
0x19a5   :  { %3171 = vrot.lane.b32.xlu1 %v3170_v12, %s4187_s30 }
0x19a7   :  { %3159 = vrot.lane.b32.xlu0 %v3158_v13, %s4178_s5 }
0x19a9   :  { %3155 = vrot.lane.b32.xlu1 %v3154_v61, %s4169_s6  ;;  %s4190_s6 = smov 29  }
0x19aa   :  { %s3238_s15 = sld [smem:[%s4803_s0 + %s4190_s6]]  }
0x19ab   :  { %3175 = vrot.lane.b32.xlu0 %v3174_v14, %s4185_s28 }
0x19ad   :  { %3109 = vrot.lane.b32.xlu1 %v3108_v19, %s4184_s27 }
0x19af   :  { %3142 = vrot.lane.b32.xlu0 %v3108_v19, %s4185_s28 }
0x19b1   :  { %3163 = vrot.lane.b32.xlu1 %v3162_v21, %s4186_s29 }
0x19b5   :  { %3179 = vrot.lane.b32.xlu1 %v3178_v22, %s4184_s27 }
0x1a15   :  { %v3168_v53 = vpop.permute.xlu0 %3167 }
0x1a17   :  { %v3172_v15 = vpop.permute.xlu1 %3171 }
0x1a19   :  { %v3160_v16 = vpop.permute.xlu0 %3159 }
0x1a1b   :  { %v3156_v29 = vpop.permute.xlu1 %3155 }
0x1a1c   :  { %v3182_v26 = vsel %vm1575_vm1, %v3005_v11, %v3156_v29 }
0x1a1d   :  { %v3176_v23 = vpop.permute.xlu0 %3175  ;;  %v3183_v34 = vsel %vm150_vm0, %v3182_v26, %v3160_v16 }
0x1a1f   :  { %v3110_v25 = vpop.permute.xlu1 %3109 }
0x1a20   :  { %v3121_v20 = vsel %vm3120_vm9, %v3119_v24, %v3110_v25 }
0x1a21   :  { %3122 = vst [vmem:[%s3238_s15] sm:$0x3] %v3121_v20  ;;  %v3143_v56 = vpop.permute.xlu0 %3142 }
0x1a22   :  { %v3151_v33 = vsel %vm3120_vm9, %v3150_v32, %v3143_v56 }
0x1a23   :  { %3152 = vst [vmem:[%s3239_s19] sm:$0x3] %v3151_v33  ;;  %v3164_v35 = vpop.permute.xlu1 %3163 }
0x1a24   :  { %v3184_v37 = vsel %vm3114_vm6, %v3183_v34, %v3164_v35 }
0x1a25   :  { %v3185_v38 = vsel %vm1877_vm2, %v3184_v37, %v3168_v53 }
0x1a26   :  { %v3186_v39 = vsel %vm3117_vm8, %v3185_v38, %v3172_v15 }
0x1a27   :  { %v3187_v40 = vsel %vm3033_vm7, %v3186_v39, %v3176_v23  ;;  %v3180_v42 = vpop.permute.xlu1 %3179 }
0x1a28   :  { %v3188_v44 = vsel %vm3120_vm9, %v3187_v40, %v3180_v42 }
0x1a29   :  { %3189 = vst [vmem:[%s3240_s23] sm:$0x3] %v3188_v44 }

</bundles_post_ra>
